<compile_context>
chip_gen: v6e
topology: v6e:2x2x1
jax: 0.10.0
libtpu: 0.0.40
codegen_flags: <defaults>
</compile_context>

<pallas_src>
import math

import jax
import jax.numpy as jnp
from jax import lax
from jax.experimental import pallas as pl

# ----------------------------- config ---------------------------------------
BERT_DIM = 768        # fixed by nn.LSTM(input_size=768, ...)
LSTM_HIDDEN = 32      # lstm_hidden_size (small for the example)
MAX_TOKENS = 8        # tokens per segment
BATCH = 2
NUM_SEGMENTS = 3
VOCAB = 64


# ----------------------------- Pallas kernel --------------------------------
def _lstm_attn_kernel(x_ref, w_ih_ref, w_hh_ref, b_ref, w_att_ref, b_att_ref,
                      out_ref):
    """All B*S segments at once: LSTM over tokens + online attention pooling.

    x_ref     : (T*P, D) bf16   time-major, P = padded number of segments
    w_ih_ref  : (D, 4H)  bf16   input->gates (pre-transposed)
    w_hh_ref  : (H, 4H)  f32    hidden->gates (pre-transposed)
    b_ref     : (1, 4H)  f32    b_ih + b_hh
    w_att_ref : (1, H)   f32    attention_pooling.weight
    b_att_ref : (1, 1)   f32    attention_pooling.bias
    out_ref   : (P, L)   f32    L = H padded to a multiple of 128 (lane dense)
    """
    H = w_hh_ref.shape[0]
    P = out_ref.shape[0]
    T = x_ref.shape[0] // P

    # Input contribution to all gates, for all segments & timesteps, in one
    # MXU pass (bf16 operands, f32 accumulation).
    xg = jnp.dot(x_ref[...], w_ih_ref[...],
                 preferred_element_type=jnp.float32) + b_ref[...]     # (T*P, 4H)

    w_hh = w_hh_ref[...]
    w_att = w_att_ref[...]
    b_att = b_att_ref[...]

    h = jnp.zeros((P, H), jnp.float32)
    c = jnp.zeros((P, H), jnp.float32)
    num = jnp.zeros((P, H), jnp.float32)     # sum_t exp(s_t) * h_t
    den = jnp.zeros((P, 1), jnp.float32)     # sum_t exp(s_t)

    # Serial recurrence, fully unrolled (T small & static). PyTorch gate order
    # i, f, g, o; the one-layer nn.LSTM dropout=0.1 is a no-op in eval.
    for t in range(T):
        g_in = xg[t * P:(t + 1) * P, :]              # aligned (P, 4H) vreg slice
        gates = g_in + jnp.dot(h, w_hh, preferred_element_type=jnp.float32)
        i_g = jax.nn.sigmoid(gates[:, 0 * H:1 * H])
        f_g = jax.nn.sigmoid(gates[:, 1 * H:2 * H])
        g_g = jnp.tanh(gates[:, 2 * H:3 * H])
        o_g = jax.nn.sigmoid(gates[:, 3 * H:4 * H])
        c = f_g * c + i_g * g_g
        h = o_g * jnp.tanh(c)

        # attention score for this timestep; tanh-bounded, so the softmax is
        # accumulated online without a max shift (mathematically identical).
        s = jnp.tanh(jnp.sum(h * w_att, axis=-1, keepdims=True) + b_att)  # (P,1)
        e = jnp.exp(s)
        num = num + e * h
        den = den + e

    pooled = num / den                                                 # (P, H)
    pad_lanes = out_ref.shape[1] - H
    if pad_lanes:                                    # make the store lane-dense
        pooled = jnp.concatenate(
            [pooled, jnp.zeros((P, pad_lanes), jnp.float32)], axis=-1)
    out_ref[...] = pooled


@jax.jit
def lstm_attn_pool(seq_out, w_ih_t, w_hh_t, b_gates, w_att, b_att):
    """seq_out: (B, S, T, D) f32 -> (B, S, H) f32 pooled segment representations."""
    B, S, T, D = seq_out.shape
    H = w_hh_t.shape[0]
    BS = B * S
    P = ((BS + 7) // 8) * 8            # pad segments to a full sublane group
    L = ((H + 127) // 128) * 128       # lane-dense output width

    # (B, S, T, D) -> time-major (T, B*S, D), pad the segment axis, flatten so
    # the kernel sees one lane-dense (T*P, D) slab.  bf16 halves the HBM->VMEM
    # traffic for the big input-gate matmul operands (accumulation stays f32).
    x = jnp.transpose(seq_out, (2, 0, 1, 3)).reshape(T, BS, D)
    x = jnp.pad(x, ((0, 0), (0, P - BS), (0, 0)))
    x2d = x.reshape(T * P, D).astype(jnp.bfloat16)

    # Single program, no grid: everything fits in VMEM, so a (B, S) grid would
    # be pure per-step pipeline overhead and weight re-DMA.
    # TODO(synk): on v7x (2 TensorCores) add a leading size-2 "parallel" grid
    #             axis splitting the padded segment rows to keep both cores busy.
    out = pl.pallas_call(
        _lstm_attn_kernel,
        out_shape=jax.ShapeDtypeStruct((P, L), jnp.float32),
    )(x2d, w_ih_t.astype(jnp.bfloat16), w_hh_t, b_gates, w_att, b_att)

    return out[:BS, :H].reshape(B, S, H)


# ----------------------------- plain-JAX reference ---------------------------
def ref_pool(seq_out, w_ih_t, w_hh_t, b_gates, w_att, b_att):
    """Reference LSTM + attention pooling (same bf16 input-gate matmul)."""
    B, S, T, D = seq_out.shape
    H = w_hh_t.shape[0]
    x = seq_out.reshape(B * S, T, D).astype(jnp.bfloat16)
    xg = jnp.dot(x, w_ih_t.astype(jnp.bfloat16),
                 preferred_element_type=jnp.float32) + b_gates[0]     # (BS,T,4H)
    xg = jnp.swapaxes(xg, 0, 1)                                       # (T,BS,4H)

    def step(carry, g_in):
        h, c = carry
        gates = g_in + jnp.dot(h, w_hh_t, precision=lax.Precision.HIGHEST)
        i_g = jax.nn.sigmoid(gates[:, :H])
        f_g = jax.nn.sigmoid(gates[:, H:2 * H])
        g_g = jnp.tanh(gates[:, 2 * H:3 * H])
        o_g = jax.nn.sigmoid(gates[:, 3 * H:])
        c = f_g * c + i_g * g_g
        h = o_g * jnp.tanh(c)
        return (h, c), h

    init = (jnp.zeros((B * S, H), jnp.float32),
            jnp.zeros((B * S, H), jnp.float32))
    _, hs = lax.scan(step, init, xg)                                  # (T,BS,H)
    scores = jnp.tanh(jnp.sum(hs * w_att[0], axis=-1) + b_att[0, 0])  # (T,BS)
    attn = jax.nn.softmax(scores, axis=0)                             # over tokens
    pooled = jnp.sum(attn[..., None] * hs, axis=0)                    # (BS,H)
    return pooled.reshape(B, S, H)


# ----------------------------- end-to-end forward ----------------------------
def segment_scale_forward(input_ids, attention_mask, params):
    """Mirrors SegmentScaleEssayModelo.forward (BERT replaced by a stand-in)."""
    emb, w_ih_t, w_hh_t, b_gates, w_att, b_att = params
    # TODO(synk): stand-in for the frozen BertModel last_hidden_state; at real
    #             BERT lengths the embedding gather + mask should be fused into
    #             the kernel (scalar-prefetched input_ids) to avoid the HBM
    #             round-trip of the (B,S,T,768) tensor.
    seq_out = (emb[input_ids] * attention_mask[..., None]).astype(jnp.float32)
    return lstm_attn_pool(seq_out, w_ih_t, w_hh_t, b_gates, w_att, b_att), seq_out


# ----------------------------- main ------------------------------------------
if __name__ == "__main__":
    key = jax.random.PRNGKey(0)
    ks = jax.random.split(key, 8)

    H = LSTM_HIDDEN
    D = BERT_DIM

    # inputs (what the torch forward receives: (batch, num_segments, max_tokens))
    input_ids = jax.random.randint(ks[0], (BATCH, NUM_SEGMENTS, MAX_TOKENS),
                                   0, VOCAB, dtype=jnp.int32)
    attention_mask = (jax.random.uniform(
        ks[1], (BATCH, NUM_SEGMENTS, MAX_TOKENS)) > 0.2).astype(jnp.float32)

    # deterministic parameters (shapes follow the module's __init__)
    emb = jax.random.normal(ks[2], (VOCAB, D), jnp.float32) * 0.02   # BERT stand-in
    sc = 1.0 / math.sqrt(H)
    w_ih = jax.random.uniform(ks[3], (4 * H, D), jnp.float32, -sc, sc)  # lstm.weight_ih_l0
    w_hh = jax.random.uniform(ks[4], (4 * H, H), jnp.float32, -sc, sc)  # lstm.weight_hh_l0
    b_ih = jax.random.uniform(ks[5], (4 * H,), jnp.float32, -sc, sc)
    b_hh = jax.random.uniform(ks[6], (4 * H,), jnp.float32, -sc, sc)
    b_gates = (b_ih + b_hh).reshape(1, 4 * H)
    w_att = jax.random.uniform(ks[7], (1, H), jnp.float32, -sc, sc)     # attention_pooling.weight
    b_att = jnp.zeros((1, 1), jnp.float32)                              # attention_pooling.bias

    params = (emb, w_ih.T, w_hh.T, b_gates, w_att, b_att)

    out, seq_out = segment_scale_forward(input_ids, attention_mask, params)
    out = jax.block_until_ready(out)
    assert out.shape == (BATCH, NUM_SEGMENTS, LSTM_HIDDEN)

    # correctness: tight tolerance vs a plain-JAX reference of the same math
    ref = ref_pool(seq_out, w_ih.T, w_hh.T, b_gates, w_att, b_att)
    err = float(jnp.max(jnp.abs(out - ref)))
    assert err < 1e-3, f"mismatch vs reference: {err}"

    print("KERNEL_OK")
</pallas_src>

<mosaic_0001>
module attributes {stable_mosaic.version = 11 : i64} {
  func.func @_lstm_attn_kernel(%arg0: memref<64x768xbf16, #tpu.memory_space<vmem>>, %arg1: memref<768x128xbf16, #tpu.memory_space<vmem>>, %arg2: memref<32x128xf32, #tpu.memory_space<vmem>>, %arg3: memref<1x128xf32, #tpu.memory_space<vmem>>, %arg4: memref<1x32xf32, #tpu.memory_space<vmem>>, %arg5: memref<1x1xf32, #tpu.memory_space<vmem>>, %arg6: memref<8x128xf32, #tpu.memory_space<vmem>>) attributes {dimension_semantics = [], scalar_prefetch = 0 : i64, scratch_operands = 0 : i64, tpu.core_type = #tpu.core_type<tc>} {
    %c0 = arith.constant 0 : index
    %c0_0 = arith.constant 0 : index
    %0 = vector.load %arg0[%c0, %c0_0] : memref<64x768xbf16, #tpu.memory_space<vmem>>, vector<64x768xbf16>
    %c0_1 = arith.constant 0 : index
    %c0_2 = arith.constant 0 : index
    %1 = vector.load %arg1[%c0_1, %c0_2] : memref<768x128xbf16, #tpu.memory_space<vmem>>, vector<768x128xbf16>
    %cst = arith.constant dense<0.000000e+00> : vector<64x128xf32>
    %2 = tpu.matmul %0, %1, %cst {dimension_numbers = #tpu.dot_dimension_numbers<[1], [0], [0], [1], [0, 0, 1, 1], [], []>} : vector<64x768xbf16>, vector<768x128xbf16>, vector<64x128xf32> -> vector<64x128xf32>
    %c0_3 = arith.constant 0 : index
    %c0_4 = arith.constant 0 : index
    %3 = vector.load %arg3[%c0_3, %c0_4] : memref<1x128xf32, #tpu.memory_space<vmem>>, vector<1x128xf32>
    %4 = vector.broadcast %3 : vector<1x128xf32> to vector<64x128xf32>
    %5 = arith.addf %2, %4 : vector<64x128xf32>
    %c0_5 = arith.constant 0 : index
    %c0_6 = arith.constant 0 : index
    %6 = vector.load %arg2[%c0_5, %c0_6] : memref<32x128xf32, #tpu.memory_space<vmem>>, vector<32x128xf32>
    %c0_7 = arith.constant 0 : index
    %c0_8 = arith.constant 0 : index
    %7 = vector.load %arg4[%c0_7, %c0_8] : memref<1x32xf32, #tpu.memory_space<vmem>>, vector<1x32xf32>
    %c0_9 = arith.constant 0 : index
    %c0_10 = arith.constant 0 : index
    %8 = vector.load %arg5[%c0_9, %c0_10] : memref<1x1xf32, #tpu.memory_space<vmem>>, vector<1x1xf32>
    %cst_11 = arith.constant 0.000000e+00 : f32
    %9 = vector.broadcast %cst_11 : f32 to vector<8x32xf32>
    %cst_12 = arith.constant 0.000000e+00 : f32
    %10 = vector.broadcast %cst_12 : f32 to vector<8x32xf32>
    %cst_13 = arith.constant 0.000000e+00 : f32
    %11 = vector.broadcast %cst_13 : f32 to vector<8x32xf32>
    %cst_14 = arith.constant 0.000000e+00 : f32
    %12 = vector.broadcast %cst_14 : f32 to vector<8x1xf32>
    %13 = vector.extract_strided_slice %5 {offsets = [0, 0], sizes = [8, 128], strides = [1, 1]} : vector<64x128xf32> to vector<8x128xf32>
    %cst_15 = arith.constant dense<0.000000e+00> : vector<8x128xf32>
    %14 = tpu.matmul %9, %6, %cst_15 {dimension_numbers = #tpu.dot_dimension_numbers<[1], [0], [0], [1], [0, 0, 1, 1], [], []>} : vector<8x32xf32>, vector<32x128xf32>, vector<8x128xf32> -> vector<8x128xf32>
    %15 = arith.addf %13, %14 : vector<8x128xf32>
    %16 = vector.extract_strided_slice %15 {offsets = [0, 0], sizes = [8, 32], strides = [1, 1]} : vector<8x128xf32> to vector<8x32xf32>
    %17 = arith.negf %16 : vector<8x32xf32>
    %18 = math.exp %17 : vector<8x32xf32>
    %cst_16 = arith.constant 1.000000e+00 : f32
    %19 = vector.broadcast %cst_16 : f32 to vector<8x32xf32>
    %20 = arith.addf %19, %18 : vector<8x32xf32>
    %21 = arith.divf %19, %20 : vector<8x32xf32>
    %22 = vector.extract_strided_slice %15 {offsets = [0, 32], sizes = [8, 32], strides = [1, 1]} : vector<8x128xf32> to vector<8x32xf32>
    %23 = arith.negf %22 : vector<8x32xf32>
    %24 = math.exp %23 : vector<8x32xf32>
    %cst_17 = arith.constant 1.000000e+00 : f32
    %25 = vector.broadcast %cst_17 : f32 to vector<8x32xf32>
    %26 = arith.addf %25, %24 : vector<8x32xf32>
    %27 = arith.divf %25, %26 : vector<8x32xf32>
    %28 = vector.extract_strided_slice %15 {offsets = [0, 64], sizes = [8, 32], strides = [1, 1]} : vector<8x128xf32> to vector<8x32xf32>
    %29 = math.tanh %28 : vector<8x32xf32>
    %30 = vector.extract_strided_slice %15 {offsets = [0, 96], sizes = [8, 32], strides = [1, 1]} : vector<8x128xf32> to vector<8x32xf32>
    %31 = arith.negf %30 : vector<8x32xf32>
    %32 = math.exp %31 : vector<8x32xf32>
    %cst_18 = arith.constant 1.000000e+00 : f32
    %33 = vector.broadcast %cst_18 : f32 to vector<8x32xf32>
    %34 = arith.addf %33, %32 : vector<8x32xf32>
    %35 = arith.divf %33, %34 : vector<8x32xf32>
    %36 = arith.mulf %27, %10 : vector<8x32xf32>
    %37 = arith.mulf %21, %29 : vector<8x32xf32>
    %38 = arith.addf %36, %37 : vector<8x32xf32>
    %39 = math.tanh %38 : vector<8x32xf32>
    %40 = arith.mulf %35, %39 : vector<8x32xf32>
    %41 = vector.broadcast %7 : vector<1x32xf32> to vector<8x32xf32>
    %42 = arith.mulf %40, %41 : vector<8x32xf32>
    %cst_19 = arith.constant dense<0.000000e+00> : vector<8xf32>
    %43 = vector.multi_reduction <add>, %42, %cst_19 [1] : vector<8x32xf32> to vector<8xf32>
    %44 = vector.shape_cast %43 : vector<8xf32> to vector<8x1xf32>
    %45 = vector.broadcast %8 : vector<1x1xf32> to vector<8x1xf32>
    %46 = arith.addf %44, %45 : vector<8x1xf32>
    %47 = math.tanh %46 : vector<8x1xf32>
    %48 = math.exp %47 : vector<8x1xf32>
    %49 = vector.broadcast %48 : vector<8x1xf32> to vector<8x32xf32>
    %50 = arith.mulf %49, %40 : vector<8x32xf32>
    %51 = arith.addf %11, %50 : vector<8x32xf32>
    %52 = arith.addf %12, %48 : vector<8x1xf32>
    %53 = vector.extract_strided_slice %5 {offsets = [8, 0], sizes = [8, 128], strides = [1, 1]} : vector<64x128xf32> to vector<8x128xf32>
    %cst_20 = arith.constant dense<0.000000e+00> : vector<8x128xf32>
    %54 = tpu.matmul %40, %6, %cst_20 {dimension_numbers = #tpu.dot_dimension_numbers<[1], [0], [0], [1], [0, 0, 1, 1], [], []>} : vector<8x32xf32>, vector<32x128xf32>, vector<8x128xf32> -> vector<8x128xf32>
    %55 = arith.addf %53, %54 : vector<8x128xf32>
    %56 = vector.extract_strided_slice %55 {offsets = [0, 0], sizes = [8, 32], strides = [1, 1]} : vector<8x128xf32> to vector<8x32xf32>
    %57 = arith.negf %56 : vector<8x32xf32>
    %58 = math.exp %57 : vector<8x32xf32>
    %cst_21 = arith.constant 1.000000e+00 : f32
    %59 = vector.broadcast %cst_21 : f32 to vector<8x32xf32>
    %60 = arith.addf %59, %58 : vector<8x32xf32>
    %61 = arith.divf %59, %60 : vector<8x32xf32>
    %62 = vector.extract_strided_slice %55 {offsets = [0, 32], sizes = [8, 32], strides = [1, 1]} : vector<8x128xf32> to vector<8x32xf32>
    %63 = arith.negf %62 : vector<8x32xf32>
    %64 = math.exp %63 : vector<8x32xf32>
    %cst_22 = arith.constant 1.000000e+00 : f32
    %65 = vector.broadcast %cst_22 : f32 to vector<8x32xf32>
    %66 = arith.addf %65, %64 : vector<8x32xf32>
    %67 = arith.divf %65, %66 : vector<8x32xf32>
    %68 = vector.extract_strided_slice %55 {offsets = [0, 64], sizes = [8, 32], strides = [1, 1]} : vector<8x128xf32> to vector<8x32xf32>
    %69 = math.tanh %68 : vector<8x32xf32>
    %70 = vector.extract_strided_slice %55 {offsets = [0, 96], sizes = [8, 32], strides = [1, 1]} : vector<8x128xf32> to vector<8x32xf32>
    %71 = arith.negf %70 : vector<8x32xf32>
    %72 = math.exp %71 : vector<8x32xf32>
    %cst_23 = arith.constant 1.000000e+00 : f32
    %73 = vector.broadcast %cst_23 : f32 to vector<8x32xf32>
    %74 = arith.addf %73, %72 : vector<8x32xf32>
    %75 = arith.divf %73, %74 : vector<8x32xf32>
    %76 = arith.mulf %67, %38 : vector<8x32xf32>
    %77 = arith.mulf %61, %69 : vector<8x32xf32>
    %78 = arith.addf %76, %77 : vector<8x32xf32>
    %79 = math.tanh %78 : vector<8x32xf32>
    %80 = arith.mulf %75, %79 : vector<8x32xf32>
    %81 = vector.broadcast %7 : vector<1x32xf32> to vector<8x32xf32>
    %82 = arith.mulf %80, %81 : vector<8x32xf32>
    %cst_24 = arith.constant dense<0.000000e+00> : vector<8xf32>
    %83 = vector.multi_reduction <add>, %82, %cst_24 [1] : vector<8x32xf32> to vector<8xf32>
    %84 = vector.shape_cast %83 : vector<8xf32> to vector<8x1xf32>
    %85 = vector.broadcast %8 : vector<1x1xf32> to vector<8x1xf32>
    %86 = arith.addf %84, %85 : vector<8x1xf32>
    %87 = math.tanh %86 : vector<8x1xf32>
    %88 = math.exp %87 : vector<8x1xf32>
    %89 = vector.broadcast %88 : vector<8x1xf32> to vector<8x32xf32>
    %90 = arith.mulf %89, %80 : vector<8x32xf32>
    %91 = arith.addf %51, %90 : vector<8x32xf32>
    %92 = arith.addf %52, %88 : vector<8x1xf32>
    %93 = vector.extract_strided_slice %5 {offsets = [16, 0], sizes = [8, 128], strides = [1, 1]} : vector<64x128xf32> to vector<8x128xf32>
    %cst_25 = arith.constant dense<0.000000e+00> : vector<8x128xf32>
    %94 = tpu.matmul %80, %6, %cst_25 {dimension_numbers = #tpu.dot_dimension_numbers<[1], [0], [0], [1], [0, 0, 1, 1], [], []>} : vector<8x32xf32>, vector<32x128xf32>, vector<8x128xf32> -> vector<8x128xf32>
    %95 = arith.addf %93, %94 : vector<8x128xf32>
    %96 = vector.extract_strided_slice %95 {offsets = [0, 0], sizes = [8, 32], strides = [1, 1]} : vector<8x128xf32> to vector<8x32xf32>
    %97 = arith.negf %96 : vector<8x32xf32>
    %98 = math.exp %97 : vector<8x32xf32>
    %cst_26 = arith.constant 1.000000e+00 : f32
    %99 = vector.broadcast %cst_26 : f32 to vector<8x32xf32>
    %100 = arith.addf %99, %98 : vector<8x32xf32>
    %101 = arith.divf %99, %100 : vector<8x32xf32>
    %102 = vector.extract_strided_slice %95 {offsets = [0, 32], sizes = [8, 32], strides = [1, 1]} : vector<8x128xf32> to vector<8x32xf32>
    %103 = arith.negf %102 : vector<8x32xf32>
    %104 = math.exp %103 : vector<8x32xf32>
    %cst_27 = arith.constant 1.000000e+00 : f32
    %105 = vector.broadcast %cst_27 : f32 to vector<8x32xf32>
    %106 = arith.addf %105, %104 : vector<8x32xf32>
    %107 = arith.divf %105, %106 : vector<8x32xf32>
    %108 = vector.extract_strided_slice %95 {offsets = [0, 64], sizes = [8, 32], strides = [1, 1]} : vector<8x128xf32> to vector<8x32xf32>
    %109 = math.tanh %108 : vector<8x32xf32>
    %110 = vector.extract_strided_slice %95 {offsets = [0, 96], sizes = [8, 32], strides = [1, 1]} : vector<8x128xf32> to vector<8x32xf32>
    %111 = arith.negf %110 : vector<8x32xf32>
    %112 = math.exp %111 : vector<8x32xf32>
    %cst_28 = arith.constant 1.000000e+00 : f32
    %113 = vector.broadcast %cst_28 : f32 to vector<8x32xf32>
    %114 = arith.addf %113, %112 : vector<8x32xf32>
    %115 = arith.divf %113, %114 : vector<8x32xf32>
    %116 = arith.mulf %107, %78 : vector<8x32xf32>
    %117 = arith.mulf %101, %109 : vector<8x32xf32>
    %118 = arith.addf %116, %117 : vector<8x32xf32>
    %119 = math.tanh %118 : vector<8x32xf32>
    %120 = arith.mulf %115, %119 : vector<8x32xf32>
    %121 = vector.broadcast %7 : vector<1x32xf32> to vector<8x32xf32>
    %122 = arith.mulf %120, %121 : vector<8x32xf32>
    %cst_29 = arith.constant dense<0.000000e+00> : vector<8xf32>
    %123 = vector.multi_reduction <add>, %122, %cst_29 [1] : vector<8x32xf32> to vector<8xf32>
    %124 = vector.shape_cast %123 : vector<8xf32> to vector<8x1xf32>
    %125 = vector.broadcast %8 : vector<1x1xf32> to vector<8x1xf32>
    %126 = arith.addf %124, %125 : vector<8x1xf32>
    %127 = math.tanh %126 : vector<8x1xf32>
    %128 = math.exp %127 : vector<8x1xf32>
    %129 = vector.broadcast %128 : vector<8x1xf32> to vector<8x32xf32>
    %130 = arith.mulf %129, %120 : vector<8x32xf32>
    %131 = arith.addf %91, %130 : vector<8x32xf32>
    %132 = arith.addf %92, %128 : vector<8x1xf32>
    %133 = vector.extract_strided_slice %5 {offsets = [24, 0], sizes = [8, 128], strides = [1, 1]} : vector<64x128xf32> to vector<8x128xf32>
    %cst_30 = arith.constant dense<0.000000e+00> : vector<8x128xf32>
    %134 = tpu.matmul %120, %6, %cst_30 {dimension_numbers = #tpu.dot_dimension_numbers<[1], [0], [0], [1], [0, 0, 1, 1], [], []>} : vector<8x32xf32>, vector<32x128xf32>, vector<8x128xf32> -> vector<8x128xf32>
    %135 = arith.addf %133, %134 : vector<8x128xf32>
    %136 = vector.extract_strided_slice %135 {offsets = [0, 0], sizes = [8, 32], strides = [1, 1]} : vector<8x128xf32> to vector<8x32xf32>
    %137 = arith.negf %136 : vector<8x32xf32>
    %138 = math.exp %137 : vector<8x32xf32>
    %cst_31 = arith.constant 1.000000e+00 : f32
    %139 = vector.broadcast %cst_31 : f32 to vector<8x32xf32>
    %140 = arith.addf %139, %138 : vector<8x32xf32>
    %141 = arith.divf %139, %140 : vector<8x32xf32>
    %142 = vector.extract_strided_slice %135 {offsets = [0, 32], sizes = [8, 32], strides = [1, 1]} : vector<8x128xf32> to vector<8x32xf32>
    %143 = arith.negf %142 : vector<8x32xf32>
    %144 = math.exp %143 : vector<8x32xf32>
    %cst_32 = arith.constant 1.000000e+00 : f32
    %145 = vector.broadcast %cst_32 : f32 to vector<8x32xf32>
    %146 = arith.addf %145, %144 : vector<8x32xf32>
    %147 = arith.divf %145, %146 : vector<8x32xf32>
    %148 = vector.extract_strided_slice %135 {offsets = [0, 64], sizes = [8, 32], strides = [1, 1]} : vector<8x128xf32> to vector<8x32xf32>
    %149 = math.tanh %148 : vector<8x32xf32>
    %150 = vector.extract_strided_slice %135 {offsets = [0, 96], sizes = [8, 32], strides = [1, 1]} : vector<8x128xf32> to vector<8x32xf32>
    %151 = arith.negf %150 : vector<8x32xf32>
    %152 = math.exp %151 : vector<8x32xf32>
    %cst_33 = arith.constant 1.000000e+00 : f32
    %153 = vector.broadcast %cst_33 : f32 to vector<8x32xf32>
    %154 = arith.addf %153, %152 : vector<8x32xf32>
    %155 = arith.divf %153, %154 : vector<8x32xf32>
    %156 = arith.mulf %147, %118 : vector<8x32xf32>
    %157 = arith.mulf %141, %149 : vector<8x32xf32>
    %158 = arith.addf %156, %157 : vector<8x32xf32>
    %159 = math.tanh %158 : vector<8x32xf32>
    %160 = arith.mulf %155, %159 : vector<8x32xf32>
    %161 = vector.broadcast %7 : vector<1x32xf32> to vector<8x32xf32>
    %162 = arith.mulf %160, %161 : vector<8x32xf32>
    %cst_34 = arith.constant dense<0.000000e+00> : vector<8xf32>
    %163 = vector.multi_reduction <add>, %162, %cst_34 [1] : vector<8x32xf32> to vector<8xf32>
    %164 = vector.shape_cast %163 : vector<8xf32> to vector<8x1xf32>
    %165 = vector.broadcast %8 : vector<1x1xf32> to vector<8x1xf32>
    %166 = arith.addf %164, %165 : vector<8x1xf32>
    %167 = math.tanh %166 : vector<8x1xf32>
    %168 = math.exp %167 : vector<8x1xf32>
    %169 = vector.broadcast %168 : vector<8x1xf32> to vector<8x32xf32>
    %170 = arith.mulf %169, %160 : vector<8x32xf32>
    %171 = arith.addf %131, %170 : vector<8x32xf32>
    %172 = arith.addf %132, %168 : vector<8x1xf32>
    %173 = vector.extract_strided_slice %5 {offsets = [32, 0], sizes = [8, 128], strides = [1, 1]} : vector<64x128xf32> to vector<8x128xf32>
    %cst_35 = arith.constant dense<0.000000e+00> : vector<8x128xf32>
    %174 = tpu.matmul %160, %6, %cst_35 {dimension_numbers = #tpu.dot_dimension_numbers<[1], [0], [0], [1], [0, 0, 1, 1], [], []>} : vector<8x32xf32>, vector<32x128xf32>, vector<8x128xf32> -> vector<8x128xf32>
    %175 = arith.addf %173, %174 : vector<8x128xf32>
    %176 = vector.extract_strided_slice %175 {offsets = [0, 0], sizes = [8, 32], strides = [1, 1]} : vector<8x128xf32> to vector<8x32xf32>
    %177 = arith.negf %176 : vector<8x32xf32>
    %178 = math.exp %177 : vector<8x32xf32>
    %cst_36 = arith.constant 1.000000e+00 : f32
    %179 = vector.broadcast %cst_36 : f32 to vector<8x32xf32>
    %180 = arith.addf %179, %178 : vector<8x32xf32>
    %181 = arith.divf %179, %180 : vector<8x32xf32>
    %182 = vector.extract_strided_slice %175 {offsets = [0, 32], sizes = [8, 32], strides = [1, 1]} : vector<8x128xf32> to vector<8x32xf32>
    %183 = arith.negf %182 : vector<8x32xf32>
    %184 = math.exp %183 : vector<8x32xf32>
    %cst_37 = arith.constant 1.000000e+00 : f32
    %185 = vector.broadcast %cst_37 : f32 to vector<8x32xf32>
    %186 = arith.addf %185, %184 : vector<8x32xf32>
    %187 = arith.divf %185, %186 : vector<8x32xf32>
    %188 = vector.extract_strided_slice %175 {offsets = [0, 64], sizes = [8, 32], strides = [1, 1]} : vector<8x128xf32> to vector<8x32xf32>
    %189 = math.tanh %188 : vector<8x32xf32>
    %190 = vector.extract_strided_slice %175 {offsets = [0, 96], sizes = [8, 32], strides = [1, 1]} : vector<8x128xf32> to vector<8x32xf32>
    %191 = arith.negf %190 : vector<8x32xf32>
    %192 = math.exp %191 : vector<8x32xf32>
    %cst_38 = arith.constant 1.000000e+00 : f32
    %193 = vector.broadcast %cst_38 : f32 to vector<8x32xf32>
    %194 = arith.addf %193, %192 : vector<8x32xf32>
    %195 = arith.divf %193, %194 : vector<8x32xf32>
    %196 = arith.mulf %187, %158 : vector<8x32xf32>
    %197 = arith.mulf %181, %189 : vector<8x32xf32>
    %198 = arith.addf %196, %197 : vector<8x32xf32>
    %199 = math.tanh %198 : vector<8x32xf32>
    %200 = arith.mulf %195, %199 : vector<8x32xf32>
    %201 = vector.broadcast %7 : vector<1x32xf32> to vector<8x32xf32>
    %202 = arith.mulf %200, %201 : vector<8x32xf32>
    %cst_39 = arith.constant dense<0.000000e+00> : vector<8xf32>
    %203 = vector.multi_reduction <add>, %202, %cst_39 [1] : vector<8x32xf32> to vector<8xf32>
    %204 = vector.shape_cast %203 : vector<8xf32> to vector<8x1xf32>
    %205 = vector.broadcast %8 : vector<1x1xf32> to vector<8x1xf32>
    %206 = arith.addf %204, %205 : vector<8x1xf32>
    %207 = math.tanh %206 : vector<8x1xf32>
    %208 = math.exp %207 : vector<8x1xf32>
    %209 = vector.broadcast %208 : vector<8x1xf32> to vector<8x32xf32>
    %210 = arith.mulf %209, %200 : vector<8x32xf32>
    %211 = arith.addf %171, %210 : vector<8x32xf32>
    %212 = arith.addf %172, %208 : vector<8x1xf32>
    %213 = vector.extract_strided_slice %5 {offsets = [40, 0], sizes = [8, 128], strides = [1, 1]} : vector<64x128xf32> to vector<8x128xf32>
    %cst_40 = arith.constant dense<0.000000e+00> : vector<8x128xf32>
    %214 = tpu.matmul %200, %6, %cst_40 {dimension_numbers = #tpu.dot_dimension_numbers<[1], [0], [0], [1], [0, 0, 1, 1], [], []>} : vector<8x32xf32>, vector<32x128xf32>, vector<8x128xf32> -> vector<8x128xf32>
    %215 = arith.addf %213, %214 : vector<8x128xf32>
    %216 = vector.extract_strided_slice %215 {offsets = [0, 0], sizes = [8, 32], strides = [1, 1]} : vector<8x128xf32> to vector<8x32xf32>
    %217 = arith.negf %216 : vector<8x32xf32>
    %218 = math.exp %217 : vector<8x32xf32>
    %cst_41 = arith.constant 1.000000e+00 : f32
    %219 = vector.broadcast %cst_41 : f32 to vector<8x32xf32>
    %220 = arith.addf %219, %218 : vector<8x32xf32>
    %221 = arith.divf %219, %220 : vector<8x32xf32>
    %222 = vector.extract_strided_slice %215 {offsets = [0, 32], sizes = [8, 32], strides = [1, 1]} : vector<8x128xf32> to vector<8x32xf32>
    %223 = arith.negf %222 : vector<8x32xf32>
    %224 = math.exp %223 : vector<8x32xf32>
    %cst_42 = arith.constant 1.000000e+00 : f32
    %225 = vector.broadcast %cst_42 : f32 to vector<8x32xf32>
    %226 = arith.addf %225, %224 : vector<8x32xf32>
    %227 = arith.divf %225, %226 : vector<8x32xf32>
    %228 = vector.extract_strided_slice %215 {offsets = [0, 64], sizes = [8, 32], strides = [1, 1]} : vector<8x128xf32> to vector<8x32xf32>
    %229 = math.tanh %228 : vector<8x32xf32>
    %230 = vector.extract_strided_slice %215 {offsets = [0, 96], sizes = [8, 32], strides = [1, 1]} : vector<8x128xf32> to vector<8x32xf32>
    %231 = arith.negf %230 : vector<8x32xf32>
    %232 = math.exp %231 : vector<8x32xf32>
    %cst_43 = arith.constant 1.000000e+00 : f32
    %233 = vector.broadcast %cst_43 : f32 to vector<8x32xf32>
    %234 = arith.addf %233, %232 : vector<8x32xf32>
    %235 = arith.divf %233, %234 : vector<8x32xf32>
    %236 = arith.mulf %227, %198 : vector<8x32xf32>
    %237 = arith.mulf %221, %229 : vector<8x32xf32>
    %238 = arith.addf %236, %237 : vector<8x32xf32>
    %239 = math.tanh %238 : vector<8x32xf32>
    %240 = arith.mulf %235, %239 : vector<8x32xf32>
    %241 = vector.broadcast %7 : vector<1x32xf32> to vector<8x32xf32>
    %242 = arith.mulf %240, %241 : vector<8x32xf32>
    %cst_44 = arith.constant dense<0.000000e+00> : vector<8xf32>
    %243 = vector.multi_reduction <add>, %242, %cst_44 [1] : vector<8x32xf32> to vector<8xf32>
    %244 = vector.shape_cast %243 : vector<8xf32> to vector<8x1xf32>
    %245 = vector.broadcast %8 : vector<1x1xf32> to vector<8x1xf32>
    %246 = arith.addf %244, %245 : vector<8x1xf32>
    %247 = math.tanh %246 : vector<8x1xf32>
    %248 = math.exp %247 : vector<8x1xf32>
    %249 = vector.broadcast %248 : vector<8x1xf32> to vector<8x32xf32>
    %250 = arith.mulf %249, %240 : vector<8x32xf32>
    %251 = arith.addf %211, %250 : vector<8x32xf32>
    %252 = arith.addf %212, %248 : vector<8x1xf32>
    %253 = vector.extract_strided_slice %5 {offsets = [48, 0], sizes = [8, 128], strides = [1, 1]} : vector<64x128xf32> to vector<8x128xf32>
    %cst_45 = arith.constant dense<0.000000e+00> : vector<8x128xf32>
    %254 = tpu.matmul %240, %6, %cst_45 {dimension_numbers = #tpu.dot_dimension_numbers<[1], [0], [0], [1], [0, 0, 1, 1], [], []>} : vector<8x32xf32>, vector<32x128xf32>, vector<8x128xf32> -> vector<8x128xf32>
    %255 = arith.addf %253, %254 : vector<8x128xf32>
    %256 = vector.extract_strided_slice %255 {offsets = [0, 0], sizes = [8, 32], strides = [1, 1]} : vector<8x128xf32> to vector<8x32xf32>
    %257 = arith.negf %256 : vector<8x32xf32>
    %258 = math.exp %257 : vector<8x32xf32>
    %cst_46 = arith.constant 1.000000e+00 : f32
    %259 = vector.broadcast %cst_46 : f32 to vector<8x32xf32>
    %260 = arith.addf %259, %258 : vector<8x32xf32>
    %261 = arith.divf %259, %260 : vector<8x32xf32>
    %262 = vector.extract_strided_slice %255 {offsets = [0, 32], sizes = [8, 32], strides = [1, 1]} : vector<8x128xf32> to vector<8x32xf32>
    %263 = arith.negf %262 : vector<8x32xf32>
    %264 = math.exp %263 : vector<8x32xf32>
    %cst_47 = arith.constant 1.000000e+00 : f32
    %265 = vector.broadcast %cst_47 : f32 to vector<8x32xf32>
    %266 = arith.addf %265, %264 : vector<8x32xf32>
    %267 = arith.divf %265, %266 : vector<8x32xf32>
    %268 = vector.extract_strided_slice %255 {offsets = [0, 64], sizes = [8, 32], strides = [1, 1]} : vector<8x128xf32> to vector<8x32xf32>
    %269 = math.tanh %268 : vector<8x32xf32>
    %270 = vector.extract_strided_slice %255 {offsets = [0, 96], sizes = [8, 32], strides = [1, 1]} : vector<8x128xf32> to vector<8x32xf32>
    %271 = arith.negf %270 : vector<8x32xf32>
    %272 = math.exp %271 : vector<8x32xf32>
    %cst_48 = arith.constant 1.000000e+00 : f32
    %273 = vector.broadcast %cst_48 : f32 to vector<8x32xf32>
    %274 = arith.addf %273, %272 : vector<8x32xf32>
    %275 = arith.divf %273, %274 : vector<8x32xf32>
    %276 = arith.mulf %267, %238 : vector<8x32xf32>
    %277 = arith.mulf %261, %269 : vector<8x32xf32>
    %278 = arith.addf %276, %277 : vector<8x32xf32>
    %279 = math.tanh %278 : vector<8x32xf32>
    %280 = arith.mulf %275, %279 : vector<8x32xf32>
    %281 = vector.broadcast %7 : vector<1x32xf32> to vector<8x32xf32>
    %282 = arith.mulf %280, %281 : vector<8x32xf32>
    %cst_49 = arith.constant dense<0.000000e+00> : vector<8xf32>
    %283 = vector.multi_reduction <add>, %282, %cst_49 [1] : vector<8x32xf32> to vector<8xf32>
    %284 = vector.shape_cast %283 : vector<8xf32> to vector<8x1xf32>
    %285 = vector.broadcast %8 : vector<1x1xf32> to vector<8x1xf32>
    %286 = arith.addf %284, %285 : vector<8x1xf32>
    %287 = math.tanh %286 : vector<8x1xf32>
    %288 = math.exp %287 : vector<8x1xf32>
    %289 = vector.broadcast %288 : vector<8x1xf32> to vector<8x32xf32>
    %290 = arith.mulf %289, %280 : vector<8x32xf32>
    %291 = arith.addf %251, %290 : vector<8x32xf32>
    %292 = arith.addf %252, %288 : vector<8x1xf32>
    %293 = vector.extract_strided_slice %5 {offsets = [56, 0], sizes = [8, 128], strides = [1, 1]} : vector<64x128xf32> to vector<8x128xf32>
    %cst_50 = arith.constant dense<0.000000e+00> : vector<8x128xf32>
    %294 = tpu.matmul %280, %6, %cst_50 {dimension_numbers = #tpu.dot_dimension_numbers<[1], [0], [0], [1], [0, 0, 1, 1], [], []>} : vector<8x32xf32>, vector<32x128xf32>, vector<8x128xf32> -> vector<8x128xf32>
    %295 = arith.addf %293, %294 : vector<8x128xf32>
    %296 = vector.extract_strided_slice %295 {offsets = [0, 0], sizes = [8, 32], strides = [1, 1]} : vector<8x128xf32> to vector<8x32xf32>
    %297 = arith.negf %296 : vector<8x32xf32>
    %298 = math.exp %297 : vector<8x32xf32>
    %cst_51 = arith.constant 1.000000e+00 : f32
    %299 = vector.broadcast %cst_51 : f32 to vector<8x32xf32>
    %300 = arith.addf %299, %298 : vector<8x32xf32>
    %301 = arith.divf %299, %300 : vector<8x32xf32>
    %302 = vector.extract_strided_slice %295 {offsets = [0, 32], sizes = [8, 32], strides = [1, 1]} : vector<8x128xf32> to vector<8x32xf32>
    %303 = arith.negf %302 : vector<8x32xf32>
    %304 = math.exp %303 : vector<8x32xf32>
    %cst_52 = arith.constant 1.000000e+00 : f32
    %305 = vector.broadcast %cst_52 : f32 to vector<8x32xf32>
    %306 = arith.addf %305, %304 : vector<8x32xf32>
    %307 = arith.divf %305, %306 : vector<8x32xf32>
    %308 = vector.extract_strided_slice %295 {offsets = [0, 64], sizes = [8, 32], strides = [1, 1]} : vector<8x128xf32> to vector<8x32xf32>
    %309 = math.tanh %308 : vector<8x32xf32>
    %310 = vector.extract_strided_slice %295 {offsets = [0, 96], sizes = [8, 32], strides = [1, 1]} : vector<8x128xf32> to vector<8x32xf32>
    %311 = arith.negf %310 : vector<8x32xf32>
    %312 = math.exp %311 : vector<8x32xf32>
    %cst_53 = arith.constant 1.000000e+00 : f32
    %313 = vector.broadcast %cst_53 : f32 to vector<8x32xf32>
    %314 = arith.addf %313, %312 : vector<8x32xf32>
    %315 = arith.divf %313, %314 : vector<8x32xf32>
    %316 = arith.mulf %307, %278 : vector<8x32xf32>
    %317 = arith.mulf %301, %309 : vector<8x32xf32>
    %318 = arith.addf %316, %317 : vector<8x32xf32>
    %319 = math.tanh %318 : vector<8x32xf32>
    %320 = arith.mulf %315, %319 : vector<8x32xf32>
    %321 = vector.broadcast %7 : vector<1x32xf32> to vector<8x32xf32>
    %322 = arith.mulf %320, %321 : vector<8x32xf32>
    %cst_54 = arith.constant dense<0.000000e+00> : vector<8xf32>
    %323 = vector.multi_reduction <add>, %322, %cst_54 [1] : vector<8x32xf32> to vector<8xf32>
    %324 = vector.shape_cast %323 : vector<8xf32> to vector<8x1xf32>
    %325 = vector.broadcast %8 : vector<1x1xf32> to vector<8x1xf32>
    %326 = arith.addf %324, %325 : vector<8x1xf32>
    %327 = math.tanh %326 : vector<8x1xf32>
    %328 = math.exp %327 : vector<8x1xf32>
    %329 = vector.broadcast %328 : vector<8x1xf32> to vector<8x32xf32>
    %330 = arith.mulf %329, %320 : vector<8x32xf32>
    %331 = arith.addf %291, %330 : vector<8x32xf32>
    %332 = arith.addf %292, %328 : vector<8x1xf32>
    %333 = vector.broadcast %332 : vector<8x1xf32> to vector<8x32xf32>
    %334 = arith.divf %331, %333 : vector<8x32xf32>
    %cst_55 = arith.constant 0.000000e+00 : f32
    %335 = vector.broadcast %cst_55 : f32 to vector<8x96xf32>
    %336 = tpu.concatenate %334, %335 in 1 : vector<8x32xf32>, vector<8x96xf32> -> vector<8x128xf32>
    %c0_56 = arith.constant 0 : index
    %c0_57 = arith.constant 0 : index
    %337 = vector.load %arg6[%c0_56, %c0_57] : memref<8x128xf32, #tpu.memory_space<vmem>>, vector<8x128xf32>
    tpu.vector_store %arg6[%c0_56, %c0_57], %336 {strides = array<i32>} : memref<8x128xf32, #tpu.memory_space<vmem>>, vector<8x128xf32>,
    return
  }
}

</mosaic_0001>

<bundles_post_ra>
// kernel: lstm_attn_pool.1
= control target key start
LH: loop header
LB: loop body
LE: loop exit
PB: predicated region body
PF: predicated region fallthrough
CT: control target
= control target key end

     0   :  { %v2280_v36 = vmov 0.0   ;;  %vm2281_vm0 = vmmov 0   ;;  %vm762_vm1 = vcmask 261120   ;;  %s2284_s7 = smov 96   ;;  %s2794_s1 = inlined_call_operand.vmem [shape: bf16[768,128], index: 1, kind: input, shape index: {}]   ;;  %s2795_s0 = inlined_call_operand.vmem [shape: bf16[64,768], index: 0, kind: input, shape index: {}]   ;;  %s2796_s2 = inlined_call_operand.vmem [shape: f32[32,128], index: 2, kind: input, shape index: {}]   ;;  %s2797_s3 = inlined_call_operand.vmem [shape: f32[1,128], index: 3, kind: input, shape index: {}]   ;;  %s2798_s4 = inlined_call_operand.vmem [shape: f32[1,32], index: 4, kind: input, shape index: {}]   ;;  %s2799_s5 = inlined_call_operand.<no memory space> [shape: f32[1,1], index: 5, kind: input, shape index: {}]   ;;  %s2800_s6 = inlined_call_operand.vmem [shape: f32[8,128], index: 6, kind: output, shape index: {}]  }
   0x1   :  { %v2098_v0 = vld [vmem:[%s2794_s1 + $0x78] sm:$0xff]   ;;  %v2102_v4 = vld [vmem:[%s2794_s1 + $0x70] sm:$0xff]   ;;  %v2106_v8 = vld [vmem:[%s2794_s1 + $0x68] sm:$0xff]  }
   0x2   :  { %v2099_v1 = vld [vmem:[%s2794_s1 + $0x38] sm:$0xff]   ;;  %1842 = vmatprep.subr.bf16.mxu0 %v2098_v0  ;;  %v2103_v5 = vld [vmem:[%s2794_s1 + $0x30] sm:$0xff]   ;;  %v2107_v9 = vld [vmem:[%s2794_s1 + $0x28] sm:$0xff]  }
   0x3   :  { %v2100_v2 = vld [vmem:[%s2794_s1 + $0xf8] sm:$0xff]   ;;  %1843 = vmatpush3.bf16.msra.mxu0 %v2099_v1  ;;  %v2104_v6 = vld [vmem:[%s2794_s1 + $0xf0] sm:$0xff]   ;;  %v2108_v10 = vld [vmem:[%s2794_s1 + $0xe8] sm:$0xff]  }
   0x4   :  { %v2101_v3 = vld [vmem:[%s2794_s1 + $0xb8] sm:$0xff]   ;;  %1882 = vmatprep.subr.bf16.mxu1 %v2100_v2  ;;  %1844 = vmatprep.subr.bf16.mxu0 %v2102_v4  ;;  %v2105_v7 = vld [vmem:[%s2794_s1 + $0xb0] sm:$0xff]   ;;  %v2109_v11 = vld [vmem:[%s2794_s1 + $0xa8] sm:$0xff]  }
   0x5   :  { %1883 = vmatpush3.bf16.msra.mxu1 %v2101_v3  ;;  %v2110_v12 = vld [vmem:[%s2794_s1 + $0x60] sm:$0xff]   ;;  %v2114_v16 = vld [vmem:[%s2794_s1 + $0x58] sm:$0xff]   ;;  %v2118_v20 = vld [vmem:[%s2794_s1 + $0x50] sm:$0xff]  }
   0x6   :  { %1884 = vmatprep.subr.bf16.mxu1 %v2104_v6  ;;  %v2111_v13 = vld [vmem:[%s2794_s1 + $0x20] sm:$0xff]   ;;  %v2115_v17 = vld [vmem:[%s2794_s1 + $0x18] sm:$0xff]   ;;  %v2119_v21 = vld [vmem:[%s2794_s1 + $0x10] sm:$0xff]  }
   0x7   :  { %1845 = vmatpush3.bf16.msra.mxu0 %v2103_v5  ;;  %v2112_v14 = vld [vmem:[%s2794_s1 + $0xe0] sm:$0xff]   ;;  %v2116_v18 = vld [vmem:[%s2794_s1 + $0xd8] sm:$0xff]   ;;  %v2120_v22 = vld [vmem:[%s2794_s1 + $0xd0] sm:$0xff]  }
   0x8   :  { %1846 = vmatprep.subr.bf16.mxu0 %v2106_v8  ;;  %v2113_v15 = vld [vmem:[%s2794_s1 + $0xa0] sm:$0xff]   ;;  %v2117_v19 = vld [vmem:[%s2794_s1 + $0x98] sm:$0xff]   ;;  %v2121_v23 = vld [vmem:[%s2794_s1 + $0x90] sm:$0xff]  }
   0x9   :  { %1885 = vmatpush3.bf16.msra.mxu1 %v2105_v7  ;;  %v2122_v24 = vld [vmem:[%s2794_s1 + $0x48] sm:$0xff]   ;;  %v2126_v28 = vld [vmem:[%s2794_s1 + $0x40] sm:$0xff]   ;;  %v2136_v37 = vld [vmem:[%s2794_s1 + $0x178] sm:$0xff]  }
   0xa   :  { %1886 = vmatprep.subr.bf16.mxu1 %v2108_v10  ;;  %v2123_v25 = vld [vmem:[%s2794_s1 + $0x8] sm:$0xff]   ;;  %v2127_v29 = vld [vmem:[%s2794_s1] sm:$0xff]   ;;  %v2137_v38 = vld [vmem:[%s2794_s1 + $0x138] sm:$0xff]  }
   0xb   :  { %1847 = vmatpush3.bf16.msra.mxu0 %v2107_v9  ;;  %v2124_v26 = vld [vmem:[%s2794_s1 + $0xc8] sm:$0xff]   ;;  %v2128_v30 = vld [vmem:[%s2794_s1 + $0xc0] sm:$0xff]   ;;  %v2138_v39 = vld [vmem:[%s2794_s1 + $0x170] sm:$0xff]  }
   0xc   :  { %1848 = vmatprep.subr.bf16.mxu0 %v2110_v12  ;;  %v2125_v27 = vld [vmem:[%s2794_s1 + $0x88] sm:$0xff]   ;;  %v2129_v31 = vld [vmem:[%s2794_s1 + $0x80] sm:$0xff]   ;;  %v2139_v40 = vld [vmem:[%s2794_s1 + $0x130] sm:$0xff]  }
   0xd   :  { %1887 = vmatpush3.bf16.msra.mxu1 %v2109_v11  ;;  %v2130_v32 = vld [vmem:[%s2795_s0] ss:$24 sps:$4 sm:$0xff]   ;;  %v2132_v33 = vld [vmem:[%s2795_s0 + $0x4] ss:$24 sps:$4 sm:$0xff]   ;;  %v2140_v41 = vld [vmem:[%s2795_s0 + $0x34] ss:$24 sps:$4 sm:$0xff]  }
   0xe   :  { %1888 = vmatprep.subr.bf16.mxu1 %v2112_v14  ;;  %v2133_v34 = vld [vmem:[%s2795_s0 + $0x8] ss:$24 sps:$4 sm:$0xff]   ;;  %v2135_v35 = vld [vmem:[%s2795_s0 + $0xc] ss:$24 sps:$4 sm:$0xff]   ;;  %593 = vmatprep.mubr.bf16.mxu0 %v2132_v33  ;;  %v2448_v42 = vld [vmem:[%s2796_s2 + $0x18] sm:$0xff] }
   0xf   :  { %1849 = vmatpush3.bf16.msra.mxu0 %v2111_v13  ;;  %658 = vmatprep.mubr.bf16.mxu1 %v2135_v35  ;;  %v2142_v43 = vld [vmem:[%s2795_s0 + $0x30] ss:$24 sps:$4 sm:$0xff]   ;;  %v2143_v44 = vld [vmem:[%s2795_s0 + $0x3c] ss:$24 sps:$4 sm:$0xff]   ;;  %v2148_v48 = vld [vmem:[%s2794_s1 + $0x160] sm:$0xff]  }
  0x10   :  { %1850 = vmatprep.subr.bf16.mxu0 %v2114_v16  ;;  %v2145_v45 = vld [vmem:[%s2794_s1 + $0x168] sm:$0xff]   ;;  %v2146_v46 = vld [vmem:[%s2795_s0 + $0x38] ss:$24 sps:$4 sm:$0xff]   ;;  %v2149_v49 = vld [vmem:[%s2794_s1 + $0x120] sm:$0xff]  }
  0x11   :  { %1889 = vmatpush3.bf16.msra.mxu1 %v2113_v15  ;;  %v2147_v47 = vld [vmem:[%s2794_s1 + $0x128] sm:$0xff]   ;;  %v2150_v50 = vld [vmem:[%s2795_s0 + $0x64] ss:$24 sps:$4 sm:$0xff]   ;;  %v2479_v51 = vld [vmem:[%s2796_s2 + $0x10] sm:$0xff] }
  0x12   :  { %1890 = vmatprep.subr.bf16.mxu1 %v2116_v18  ;;  %v2152_v52 = vld [vmem:[%s2795_s0 + $0x60] ss:$24 sps:$4 sm:$0xff]   ;;  %v2153_v53 = vld [vmem:[%s2795_s0 + $0x6c] ss:$24 sps:$4 sm:$0xff]   ;;  %v2158_v57 = vld [vmem:[%s2794_s1 + $0x150] sm:$0xff]  }
  0x13   :  { %1851 = vmatpush3.bf16.msra.mxu0 %v2115_v17  ;;  %v2155_v54 = vld [vmem:[%s2794_s1 + $0x158] sm:$0xff]   ;;  %v2156_v55 = vld [vmem:[%s2795_s0 + $0x68] ss:$24 sps:$4 sm:$0xff]   ;;  %v2160_v58 = vld [vmem:[%s2795_s0 + $0x94] ss:$24 sps:$4 sm:$0xff]  }
  0x14   :  { %1852 = vmatprep.subr.bf16.mxu0 %v2118_v20  ;;  %v2157_v56 = vld [vmem:[%s2794_s1 + $0x118] sm:$0xff]   ;;  %v2507_v59 = vld [vmem:[%s2796_s2 + $0x8] sm:$0xff]  ;;  %v2159_v60 = vld [vmem:[%s2794_s1 + $0x110] sm:$0xff]  }
  0x15   :  { %1891 = vmatpush3.bf16.msra.mxu1 %v2117_v19  ;;  %v2163_v61 = vld [vmem:[%s2795_s0 + $0x9c] ss:$24 sps:$4 sm:$0xff]   ;;  %v2162_v62 = vld [vmem:[%s2795_s0 + $0x90] ss:$24 sps:$4 sm:$0xff]   ;;  %v2168_v2 = vld [vmem:[%s2794_s1 + $0x140] sm:$0xff]  }
  0x16   :  { %1892 = vmatprep.subr.bf16.mxu1 %v2120_v22  ;;  %v2165_v63 = vld [vmem:[%s2794_s1 + $0x148] sm:$0xff]   ;;  %v2166_v0 = vld [vmem:[%s2795_s0 + $0x98] ss:$24 sps:$4 sm:$0xff]   ;;  %v2538_v4 = vld [vmem:[%s2796_s2] sm:$0xff] }
  0x17   :  { %1853 = vmatpush3.bf16.msra.mxu0 %v2119_v21  ;;  %v2167_v1 = vld [vmem:[%s2794_s1 + $0x108] sm:$0xff]   ;;  %v2169_v5 = vld [vmem:[%s2794_s1 + $0x100] sm:$0xff]  }
  0x18   :  { %1854 = vmatprep.subr.bf16.mxu0 %v2122_v24  ;;  %v2172_v3 = vld [vmem:[%s2795_s0 + $0x14] ss:$24 sps:$4 sm:$0xff]   ;;  %v2170_v6 = vld [vmem:[%s2795_s0 + $0x10] ss:$24 sps:$4 sm:$0xff]   ;;  %v2173_v7 = vld [vmem:[%s2795_s0 + $0x44] ss:$24 sps:$4 sm:$0xff]  }
  0x19   :  { %1893 = vmatpush3.bf16.msra.mxu1 %v2121_v23  ;;  %v2175_v8 = vld [vmem:[%s2795_s0 + $0x40] ss:$24 sps:$4 sm:$0xff]   ;;  %v2176_v9 = vld [vmem:[%s2795_s0 + $0x74] ss:$24 sps:$4 sm:$0xff]   ;;  %v2178_v10 = vld [vmem:[%s2795_s0 + $0x70] ss:$24 sps:$4 sm:$0xff]  }
  0x1a   :  { %1894 = vmatprep.subr.bf16.mxu1 %v2124_v26  ;;  %v2179_v11 = vld [vmem:[%s2795_s0 + $0xa4] ss:$24 sps:$4 sm:$0xff]   ;;  %v2181_v12 = vld [vmem:[%s2795_s0 + $0xa0] ss:$24 sps:$4 sm:$0xff]   ;;  %s2282_s0 = smov 64  }
  0x1b   :  { %1855 = vmatpush3.bf16.msra.mxu0 %v2123_v25  ;;  %v1752_v22 = vld [vmem:[%s2797_s3] ss:$0 sm:$0xff]  ;;  %s2283_s3 = smov 32  }
  0x1c   :  { %1856 = vmatprep.subr.bf16.mxu0 %v2126_v28 }
  0x1d   :  { %1895 = vmatpush3.bf16.msra.mxu1 %v2125_v27 }
  0x1e   :  { %1896 = vmatprep.subr.bf16.mxu1 %v2128_v30 }
  0x1f   :  { %1857 = vmatpush3.bf16.msra.mxu0 %v2127_v29 }
  0x20   :  { %1922 = vmatprep.subr.bf16.mxu0 %v2136_v37 }
  0x21   :  { %1897 = vmatpush3.bf16.msra.mxu1 %v2129_v31 }
  0x22   :  { %2002 = vmatprep.subr.mxu1 %v2280_v36  ;;  %594 = vmatmul.mubr.bf16.vlgmr.msra.gmra.mxu0 %v2130_v32 }
  0x23   :  { %1923 = vmatpush3.bf16.msra.mxu0 %v2137_v38  ;;  %601 = vmatprep.mubr.bf16.mxu0 %v2140_v41 }
  0x24   :  { %659 = vmatmul.mubr.bf16.vlgmr.msra.gmra.mxu1 %v2133_v34  ;;  %1924 = vmatprep.subr.bf16.mxu0 %v2138_v39 }
  0x25   :  { %2003 = vmatpush3.msra.mxu1 %v2448_v42  ;;  %666 = vmatprep.mubr.bf16.mxu1 %v2143_v44 }
  0x26   :  { %2004 = vmatprep.subr.mxu1 %v2280_v36 }
  0x27   :  { %1925 = vmatpush3.bf16.msra.mxu0 %v2139_v40  ;;  %2005 = vmatpush3.msra.mxu1 %v2479_v51 }
  0x28   :  { %1926 = vmatprep.subr.bf16.mxu0 %v2145_v45  ;;  %2006 = vmatprep.subr.mxu1 %v2280_v36 }
  0x29   :  { %2007 = vmatpush3.msra.mxu1 %v2507_v59 }
  0x2a   :  { %602 = vmatmul.mubr.bf16.gmra.mxu0 %v2142_v43  ;;  %2008 = vmatprep.subr.mxu1 %v2280_v36 }
  0x2b   :  { %1927 = vmatpush3.bf16.msra.mxu0 %v2147_v47  ;;  %609 = vmatprep.mubr.bf16.mxu0 %v2150_v50 }
  0x2c   :  { %667 = vmatmul.mubr.bf16.gmra.mxu1 %v2146_v46  ;;  %1928 = vmatprep.subr.bf16.mxu0 %v2148_v48 }
  0x2d   :  { %674 = vmatprep.mubr.bf16.mxu1 %v2153_v53  ;;  %2009 = vmatpush3.msra.mxu1 %v2538_v4 }
  0x2e   :  { %2013 = vmatprep.subr.mxu1 %v2280_v36 }
  0x2f   :  { %1929 = vmatpush3.bf16.msra.mxu0 %v2149_v49 }
  0x30   :  { %1930 = vmatprep.subr.bf16.mxu0 %v2155_v54 }
  0x32   :  { %610 = vmatmul.mubr.bf16.gmra.mxu0 %v2152_v52 }
  0x33   :  { %1931 = vmatpush3.bf16.msra.mxu0 %v2157_v56  ;;  %617 = vmatprep.mubr.bf16.mxu0 %v2160_v58 }
  0x34   :  { %675 = vmatmul.mubr.bf16.gmra.mxu1 %v2156_v55  ;;  %1932 = vmatprep.subr.bf16.mxu0 %v2158_v57 }
  0x35   :  { %682 = vmatprep.mubr.bf16.mxu1 %v2163_v61 }
  0x37   :  { %1933 = vmatpush3.bf16.msra.mxu0 %v2159_v60 }
  0x38   :  { %1934 = vmatprep.subr.bf16.mxu0 %v2165_v63 }
  0x3a   :  { %618 = vmatmul.mubr.bf16.gmra.mxu0 %v2162_v62 }
  0x3b   :  { %1935 = vmatpush3.bf16.msra.mxu0 %v2167_v1  ;;  %723 = vmatprep.mubr.bf16.mxu0 %v2172_v3 }
  0x3c   :  { %683 = vmatmul.mubr.bf16.gmra.mxu1 %v2166_v0  ;;  %1936 = vmatprep.subr.bf16.mxu0 %v2168_v2 }
  0x3d   :  { %2010 = vmatprep.mubr.msk.f32.mxu1 %vm2281_vm0, %v2280_v36 }
  0x3f   :  { %1937 = vmatpush3.bf16.msra.mxu0 %v2169_v5 }
  0x40   :  { %2046 = vmatprep.subr.mxu0 %v2280_v36 }
  0x42   :  { %724 = vmatmul.mubr.bf16.vlgmr.msra.gmra.mxu0 %v2170_v6 }
  0x43   :  { %731 = vmatprep.mubr.bf16.mxu0 %v2173_v7  ;;  %2047 = vmatpush3.msra.mxu0 %v2448_v42 }
  0x44   :  { %2011 = vmatmul.mubr.f32.vlgmr.msra.gmra.mxu1 %v2280_v36  ;;  %2048 = vmatprep.subr.mxu0 %v2280_v36 }
  0x45   :  { %2014 = vmatpush3.msra.mxu1 %v2448_v42  ;;  %2021 = vmatprep.mubr.msk.f32.mxu1 %vm2281_vm0, %v2280_v36 }
  0x46   :  { %2015 = vmatprep.subr.mxu1 %v2280_v36  ;;  %2049 = vmatpush3.msra.mxu0 %v2479_v51 }
  0x47   :  { %2016 = vmatpush3.msra.mxu1 %v2479_v51  ;;  %2050 = vmatprep.subr.mxu0 %v2280_v36 }
  0x48   :  { %2017 = vmatprep.subr.mxu1 %v2280_v36  ;;  %2051 = vmatpush3.msra.mxu0 %v2507_v59 }
  0x49   :  { %2018 = vmatpush3.msra.mxu1 %v2507_v59  ;;  %2052 = vmatprep.subr.mxu0 %v2280_v36 }
  0x4a   :  { %2019 = vmatprep.subr.mxu1 %v2280_v36  ;;  %732 = vmatmul.mubr.bf16.gmra.mxu0 %v2175_v8 }
  0x4b   :  { %2020 = vmatpush3.msra.mxu1 %v2538_v4  ;;  %739 = vmatprep.mubr.bf16.mxu0 %v2176_v9 }
  0x4c   :  { %2024 = vmatprep.subr.mxu1 %v2280_v36  ;;  %2053 = vmatpush3.msra.mxu0 %v2538_v4 }
  0x4d   :  { %2068 = vmatprep.subr.mxu0 %v2280_v36 }
  0x52   :  { %740 = vmatmul.mubr.bf16.gmra.mxu0 %v2178_v10 }
  0x53   :  { %747 = vmatprep.mubr.bf16.mxu0 %v2179_v11 }
  0x5a   :  { %748 = vmatmul.mubr.bf16.gmra.mxu0 %v2181_v12 }
  0x5b   :  { %2054 = vmatprep.mubr.msk.f32.mxu0 %vm2281_vm0, %v2280_v36 }
  0xe2   :  { %v1858_v13 = vpop.f32.mrf.mxu0 }
  0xe4   :  { %v1898_v14 = vpop.f32.mrf.mxu1  ;;  %v1859_v15 = vpop.f32.mrf.mxu0 }
  0xe5   :  { %v1860_v3 = vadd.f32 %v1859_v15, %v1858_v13 }
  0xe6   :  { %v1899_v16 = vpop.f32.mrf.mxu1  ;;  %v1861_v17 = vpop.f32.mrf.mxu0 }
  0xe8   :  { %v1901_v18 = vpop.f32.mrf.mxu1  ;;  %v1862_v19 = vpop.f32.mrf.mxu0 }
  0xe9   :  { %v1863_v20 = vadd.f32 %v1862_v19, %v1861_v17  ;;  %v596_v17 = vadd.f32 %v1860_v3, %v1752_v22 }
  0xea   :  { %v1902_v21 = vpop.f32.mrf.mxu1  ;;  %v1864_v24 = vpop.f32.mrf.mxu0 }
  0xeb   :  { %v1903_v23 = vadd.f32 %v1902_v21, %v1901_v18  ;;  %v599_v25 = vadd.f32 %v1863_v20, %v1752_v22  ;;  %v1900_v18 = vadd.f32 %v1899_v16, %v1898_v14 }
  0xec   :  { %v1904_v26 = vpop.f32.mrf.mxu1  ;;  %v1865_v27 = vpop.f32.mrf.mxu0 }
  0xed   :  { %v2593_v28 = vadd.f32 %v1903_v23, %v599_v25  ;;  %v1866_v29 = vadd.f32 %v1865_v27, %v1864_v24  ;;  %v661_v27 = vadd.f32 %v1900_v18, %v596_v17 }
  0xee   :  { %v1905_v30 = vpop.f32.mrf.mxu1  ;;  %v1867_v32 = vpop.f32.mrf.mxu0 }
  0xef   :  { %v1906_v31 = vadd.f32 %v1905_v30, %v1904_v26  ;;  %v604_v33 = vadd.f32 %v1866_v29, %v1752_v22 }
  0xf0   :  { %v1907_v34 = vpop.f32.mrf.mxu1  ;;  %v1868_v35 = vpop.f32.mrf.mxu0 }
  0xf1   :  { %v2595_v37 = vadd.f32 %v1906_v31, %v604_v33  ;;  %v1869_v38 = vadd.f32 %v1868_v35, %v1867_v32 }
  0xf2   :  { %v1908_v39 = vpop.f32.mrf.mxu1  ;;  %v1870_v41 = vpop.f32.mrf.mxu0 }
  0xf3   :  { %v1909_v40 = vadd.f32 %v1908_v39, %v1907_v34  ;;  %v607_v43 = vadd.f32 %v1869_v38, %v1752_v22 }
  0xf4   :  { %v1910_v44 = vpop.f32.mrf.mxu1  ;;  %v1871_v45 = vpop.f32.mrf.mxu0 }
  0xf5   :  { %v2597_v46 = vadd.f32 %v1909_v40, %v607_v43  ;;  %v1872_v47 = vadd.f32 %v1871_v45, %v1870_v41 }
  0xf6   :  { %v1911_v48 = vpop.f32.mrf.mxu1  ;;  %v1873_v50 = vpop.f32.mrf.mxu0 }
  0xf7   :  { %v1912_v49 = vadd.f32 %v1911_v48, %v1910_v44  ;;  %v612_v52 = vadd.f32 %v1872_v47, %v1752_v22 }
  0xf8   :  { %v1913_v53 = vpop.f32.mrf.mxu1  ;;  %v1874_v54 = vpop.f32.mrf.mxu0 }
  0xf9   :  { %v2599_v55 = vadd.f32 %v1912_v49, %v612_v52  ;;  %v1875_v56 = vadd.f32 %v1874_v54, %v1873_v50 }
  0xfa   :  { %v1914_v57 = vpop.f32.mrf.mxu1  ;;  %v1876_v60 = vpop.f32.mrf.mxu0 }
  0xfb   :  { %v1915_v58 = vadd.f32 %v1914_v57, %v1913_v53  ;;  %v615_v61 = vadd.f32 %v1875_v56, %v1752_v22 }
  0xfc   :  { %v1916_v62 = vpop.f32.mrf.mxu1  ;;  %v1877_v63 = vpop.f32.mrf.mxu0 }
  0xfd   :  { %v680_v0 = vadd.f32 %v1915_v58, %v615_v61  ;;  %v1878_v1 = vadd.f32 %v1877_v63, %v1876_v60 }
  0xfe   :  { %v1917_v2 = vpop.f32.mrf.mxu1  ;;  %v1879_v6 = vpop.f32.mrf.mxu0 }
  0xff   :  { %v1918_v5 = vadd.f32 %v1917_v2, %v1916_v62  ;;  %v620_v7 = vadd.f32 %v1878_v1, %v1752_v22 }
 0x100   :  { %v1919_v8 = vpop.f32.mrf.mxu1  ;;  %v1880_v9 = vpop.f32.mrf.mxu0 }
 0x101   :  { %v685_v10 = vadd.f32 %v1918_v5, %v620_v7  ;;  %v1881_v11 = vadd.f32 %v1880_v9, %v1879_v6 }
 0x102   :  { %v1920_v12 = vpop.f32.mrf.mxu1  ;;  %v1938_v21 = vpop.f32.mrf.mxu0 }
 0x103   :  { %v1921_v19 = vadd.f32 %v1920_v12, %v1919_v8  ;;  %v623_v20 = vadd.f32 %v1881_v11, %v1752_v22 }
 0x104   :  { %v832_v23 = vpop.f32.mrf.mxu1  ;;  %v1939_v25 = vpop.f32.mrf.mxu0 }
 0x105   :  { %v688_v24 = vadd.f32 %v1921_v19, %v623_v20  ;;  %v1940_v29 = vadd.f32 %v1939_v25, %v1938_v21 }
 0x106   :  { %v2012_v26 = vpop.f32.mrf.mxu1  ;;  %v1941_v13 = vpop.f32.mrf.mxu0 }
 0x107   :  { %v726_v15 = vadd.f32 %v1940_v29, %v661_v27 }
 0x108   :  { %v1942_v30 = vpop.f32.mrf.mxu0 }
 0x109   :  { %v836_v31 = vadd.f32 %v832_v23, %v726_v15  ;;  %v1943_v5 = vadd.f32 %v1942_v30, %v1941_v13 }
 0x10a   :  { %v2601_v32 = vpop.f32.mrf.mxu0 }
 0x10b   :  { %2182 = vtanh.f32 %v836_v31  ;;  %v1825_v53 = vmul.f32 -1.442695, %v836_v31  ;;  %v729_v6 = vadd.f32 %v1943_v5, %v2593_v28 }
 0x10c   :  { %v2603_v33 = vpop.f32.mrf.mxu0 }
 0x10d   :  { %2184 = vpow2.f32 %v1825_v53  ;;  %v1946_v29 = vadd.f32 %v2603_v33, %v2601_v32 }
 0x10e   :  { %v2605_v34 = vpop.f32.mrf.mxu0 }
 0x10f   :  { %v734_v13 = vadd.f32 %v1946_v29, %v2595_v37 }
 0x110   :  { %v2607_v14 = vpop.f32.mrf.mxu0 }
 0x112   :  { %v2609_v16 = vpop.f32.mrf.mxu0 }
 0x114   :  { %v2611_v22 = vpop.f32.mrf.mxu0 }
 0x116   :  { %v1953_v35 = vpop.f32.mrf.mxu0 }
 0x118   :  { %v2183_v38 = vpop.eup %2182  ;;  %v1954_v39 = vpop.f32.mrf.mxu0 }
 0x119   :  { %v1955_v40 = vadd.f32 %v1954_v39, %v1953_v35  ;;  %846 = vrot.lane.b32.xlu0 %v2183_v38, %s2282_s0 }
 0x11a   :  { %v1956_v41 = vpop.f32.mrf.mxu0  ;;  %v2185_v54 = vpop.eup %2184 }
 0x11b   :  { %v2614_v43 = vadd.f32 %v1955_v40, %v680_v0  ;;  %v840_v56 = vadd.f32 1.0, %v2185_v54  ;;  %v1949_v54 = vadd.f32 %v2607_v14, %v2605_v34 }
 0x11c   :  { %v1957_v44 = vpop.f32.mrf.mxu0 }
 0x11d   :  { %v1958_v45 = vadd.f32 %v1957_v44, %v1956_v41  ;;  %2186 = vrcp.f32 %v840_v56  ;;  %v737_v56 = vadd.f32 %v1949_v54, %v2597_v46 }
 0x11e   :  { %v1959_v47 = vpop.f32.mrf.mxu0 }
 0x11f   :  { %v2616_v48 = vadd.f32 %v1958_v45, %v685_v10 }
 0x120   :  { %v1960_v49 = vpop.f32.mrf.mxu0 }
 0x121   :  { %v1961_v50 = vadd.f32 %v1960_v49, %v1959_v47 }
 0x123   :  { %v2618_v52 = vadd.f32 %v1961_v50, %v688_v24 }
 0x12a   :  { %v2187_v57 = vpop.eup %2186 }
 0x12b   :  { %v844_v61 = vmul.f32 0.0, %v2187_v57 }
 0x18b   :  { %v847_v58 = vpop.permute.xlu0 %846 }
 0x18c   :  { %v849_v60 = vmul.f32 %v2187_v57, %v847_v58 }
 0x18e   :  { %851 = vrot.lane.b32.xlu0 %v849_v60, %s2283_s3 }
 0x200   :  { %v852_v62 = vpop.permute.xlu0 %851 }
 0x201   :  { %v854_v63 = vadd.f32 %v852_v62, %v844_v61 }
 0x203   :  { %2188 = vtanh.f32 %v854_v63 }
 0x210   :  { %v2189_v0 = vpop.eup %2188 }
 0x211   :  { %857 = vrot.lane.b32.xlu1 %v2189_v0, %s2282_s0 }
 0x283   :  { %v858_v1 = vpop.permute.xlu1 %857 }
 0x284   :  { %v2622_v2 = vmul.f32 %v2187_v57, %v858_v1 }
 0x286   :  { %896 = vrot.lane.b32.xlu1 %v2622_v2, %s2283_s3 }
 0x2f8   :  { %v897_v3 = vpop.permute.xlu1 %896 }
 0x2f9   :  { %2022 = vmatmul.mubr.msk.f32.vlgmr.msra.gmra.mxu1 %vm762_vm1, %v897_v3 }
 0x2fa   :  { %2025 = vmatpush3.msra.mxu1 %v2448_v42  ;;  %2032 = vmatprep.mubr.msk.f32.mxu1 %vm2281_vm0, %v2280_v36 }
 0x2fb   :  { %2026 = vmatprep.subr.mxu1 %v2280_v36 }
 0x2fc   :  { %2027 = vmatpush3.msra.mxu1 %v2479_v51 }
 0x2fd   :  { %2028 = vmatprep.subr.mxu1 %v2280_v36 }
 0x2fe   :  { %2029 = vmatpush3.msra.mxu1 %v2507_v59 }
 0x2ff   :  { %2030 = vmatprep.subr.mxu1 %v2280_v36 }
 0x300   :  { %2031 = vmatpush3.msra.mxu1 %v2538_v4 }
 0x301   :  { %2035 = vmatprep.subr.mxu1 %v2280_v36 }
 0x3b9   :  { %v966_v7 = vpop.f32.mrf.mxu1 }
 0x3ba   :  { %v970_v8 = vadd.f32 %v966_v7, %v729_v6 }
 0x3bb   :  { %v2023_v9 = vpop.f32.mrf.mxu1 }
 0x3bc   :  { %2190 = vtanh.f32 %v970_v8  ;;  %v1829_v11 = vmul.f32 -1.442695, %v970_v8 }
 0x3be   :  { %2192 = vpow2.f32 %v1829_v11 }
 0x3c9   :  { %v2191_v10 = vpop.eup %2190 }
 0x3ca   :  { %980 = vrot.lane.b32.xlu0 %v2191_v10, %s2282_s0  ;;  %v1952_v10 = vadd.f32 %v2611_v22, %v2609_v16 }
 0x3cb   :  { %v2193_v12 = vpop.eup %2192 }
 0x3cc   :  { %v974_v17 = vadd.f32 1.0, %v2193_v12  ;;  %v742_v11 = vadd.f32 %v1952_v10, %v2599_v55 }
 0x3ce   :  { %2194 = vrcp.f32 %v974_v17 }
 0x3db   :  { %v2195_v18 = vpop.eup %2194 }
 0x3dc   :  { %v978_v21 = vmul.f32 %v2195_v18, %v854_v63 }
 0x43c   :  { %v981_v19 = vpop.permute.xlu0 %980 }
 0x43d   :  { %v983_v20 = vmul.f32 %v2195_v18, %v981_v19 }
 0x43f   :  { %985 = vrot.lane.b32.xlu1 %v983_v20, %s2283_s3 }
 0x4b1   :  { %v986_v23 = vpop.permute.xlu1 %985 }
 0x4b2   :  { %v988_v28 = vadd.f32 %v986_v23, %v978_v21 }
 0x4b4   :  { %2196 = vtanh.f32 %v988_v28 }
 0x4c1   :  { %v2197_v24 = vpop.eup %2196 }
 0x4c2   :  { %991 = vrot.lane.b32.xlu0 %v2197_v24, %s2282_s0 }
 0x534   :  { %v992_v25 = vpop.permute.xlu0 %991 }
 0x535   :  { %v2641_v26 = vmul.f32 %v2195_v18, %v992_v25 }
 0x537   :  { %1016 = vrot.lane.b32.xlu1 %v2641_v26, %s2283_s3 }
 0x5a9   :  { %v1017_v27 = vpop.permute.xlu1 %1016 }
 0x5aa   :  { %2033 = vmatmul.mubr.msk.f32.vlgmr.msra.gmra.mxu1 %vm762_vm1, %v1017_v27 }
 0x5ab   :  { %2036 = vmatpush3.msra.mxu1 %v2448_v42  ;;  %2043 = vmatprep.mubr.msk.f32.mxu1 %vm2281_vm0, %v2280_v36 }
 0x5ac   :  { %2037 = vmatprep.subr.mxu1 %v2280_v36 }
 0x5ad   :  { %2038 = vmatpush3.msra.mxu1 %v2479_v51 }
 0x5ae   :  { %2039 = vmatprep.subr.mxu1 %v2280_v36 }
 0x5af   :  { %2040 = vmatpush3.msra.mxu1 %v2507_v59 }
 0x5b0   :  { %2041 = vmatprep.subr.mxu1 %v2280_v36 }
 0x5b1   :  { %2042 = vmatpush3.msra.mxu1 %v2538_v4 }
 0x5b2   :  { %2057 = vmatprep.subr.mxu1 %v2280_v36 }
 0x66a   :  { %v1086_v15 = vpop.f32.mrf.mxu1 }
 0x66b   :  { %v1090_v30 = vadd.f32 %v1086_v15, %v734_v13 }
 0x66c   :  { %v2034_v31 = vpop.f32.mrf.mxu1 }
 0x66d   :  { %2198 = vtanh.f32 %v1090_v30  ;;  %v1831_v38 = vmul.f32 -1.442695, %v1090_v30 }
 0x66f   :  { %2200 = vpow2.f32 %v1831_v38 }
 0x67a   :  { %v2199_v35 = vpop.eup %2198 }
 0x67b   :  { %1100 = vrot.lane.b32.xlu0 %v2199_v35, %s2282_s0 }
 0x67c   :  { %v2201_v39 = vpop.eup %2200 }
 0x67d   :  { %v1094_v40 = vadd.f32 1.0, %v2201_v39 }
 0x67f   :  { %2202 = vrcp.f32 %v1094_v40 }
 0x68c   :  { %v2203_v41 = vpop.eup %2202 }
 0x68d   :  { %v1098_v32 = vmul.f32 %v2203_v41, %v988_v28 }
 0x6ed   :  { %v1101_v44 = vpop.permute.xlu0 %1100 }
 0x6ee   :  { %v1103_v45 = vmul.f32 %v2203_v41, %v1101_v44 }
 0x6f0   :  { %1105 = vrot.lane.b32.xlu1 %v1103_v45, %s2283_s3 }
 0x762   :  { %v1106_v33 = vpop.permute.xlu1 %1105 }
 0x763   :  { %v1108_v37 = vadd.f32 %v1106_v33, %v1098_v32 }
 0x765   :  { %2204 = vtanh.f32 %v1108_v37 }
 0x772   :  { %v2205_v47 = vpop.eup %2204 }
 0x773   :  { %1111 = vrot.lane.b32.xlu0 %v2205_v47, %s2282_s0 }
 0x7e5   :  { %v1112_v49 = vpop.permute.xlu0 %1111 }
 0x7e6   :  { %v2662_v50 = vmul.f32 %v2203_v41, %v1112_v49 }
 0x7e8   :  { %1136 = vrot.lane.b32.xlu1 %v2662_v50, %s2283_s3 }
 0x85a   :  { %v1137_v53 = vpop.permute.xlu1 %1136 }
 0x85b   :  { %2044 = vmatmul.mubr.msk.f32.vlgmr.msra.gmra.mxu1 %vm762_vm1, %v1137_v53 }
 0x85c   :  { %2058 = vmatpush3.msra.mxu1 %v2448_v42  ;;  %2065 = vmatprep.mubr.msk.f32.mxu1 %vm2281_vm0, %v2280_v36 }
 0x85d   :  { %2059 = vmatprep.subr.mxu1 %v2280_v36 }
 0x85e   :  { %2060 = vmatpush3.msra.mxu1 %v2479_v51 }
 0x85f   :  { %2061 = vmatprep.subr.mxu1 %v2280_v36 }
 0x860   :  { %2062 = vmatpush3.msra.mxu1 %v2507_v59 }
 0x861   :  { %2063 = vmatprep.subr.mxu1 %v2280_v36 }
 0x862   :  { %2064 = vmatpush3.msra.mxu1 %v2538_v4 }
 0x863   :  { %2079 = vmatprep.subr.mxu1 %v2280_v36 }
 0x91b   :  { %v1206_v57 = vpop.f32.mrf.mxu1 }
 0x91c   :  { %v1210_v58 = vadd.f32 %v1206_v57, %v737_v56 }
 0x91d   :  { %v2045_v60 = vpop.f32.mrf.mxu1 }
 0x91e   :  { %2206 = vtanh.f32 %v1210_v58  ;;  %v1833_v62 = vmul.f32 -1.442695, %v1210_v58 }
 0x920   :  { %2208 = vpow2.f32 %v1833_v62 }
 0x92b   :  { %v2207_v61 = vpop.eup %2206 }
 0x92c   :  { %1220 = vrot.lane.b32.xlu0 %v2207_v61, %s2282_s0 }
 0x92d   :  { %v2209_v63 = vpop.eup %2208 }
 0x92e   :  { %v1214_v0 = vadd.f32 1.0, %v2209_v63 }
 0x930   :  { %2210 = vrcp.f32 %v1214_v0 }
 0x93d   :  { %v2211_v1 = vpop.eup %2210 }
 0x93e   :  { %v1218_v34 = vmul.f32 %v2211_v1, %v1108_v37 }
 0x99e   :  { %v1221_v3 = vpop.permute.xlu0 %1220 }
 0x99f   :  { %v1223_v5 = vmul.f32 %v2211_v1, %v1221_v3 }
 0x9a1   :  { %1225 = vrot.lane.b32.xlu1 %v1223_v5, %s2283_s3 }
 0xa13   :  { %v1226_v14 = vpop.permute.xlu1 %1225 }
 0xa14   :  { %v1228_v46 = vadd.f32 %v1226_v14, %v1218_v34 }
 0xa16   :  { %2212 = vtanh.f32 %v1228_v46 }
 0xa23   :  { %v2213_v6 = vpop.eup %2212 }
 0xa24   :  { %1231 = vrot.lane.b32.xlu0 %v2213_v6, %s2282_s0 }
 0xa96   :  { %v1232_v7 = vpop.permute.xlu0 %1231 }
 0xa97   :  { %v2683_v8 = vmul.f32 %v2211_v1, %v1232_v7  ;;  %v1826_v7 = vld [vmem:[%s2798_s4] ss:$0 sm:$0xff] }
 0xa99   :  { %1256 = vrot.lane.b32.xlu1 %v2683_v8, %s2283_s3 }
 0xb0b   :  { %v1257_v9 = vpop.permute.xlu1 %1256 }
 0xb0c   :  { %2055 = vmatmul.mubr.msk.f32.vlgmr.msra.gmra.mxu0 %vm762_vm1, %v1257_v9 }
 0xb0d   :  { %2069 = vmatpush3.msra.mxu0 %v2448_v42  ;;  %2076 = vmatprep.mubr.msk.f32.mxu0 %vm2281_vm0, %v2280_v36 }
 0xb0e   :  { %2070 = vmatprep.subr.mxu0 %v2280_v36 }
 0xb0f   :  { %2071 = vmatpush3.msra.mxu0 %v2479_v51 }
 0xb10   :  { %2072 = vmatprep.subr.mxu0 %v2280_v36 }
 0xb11   :  { %2073 = vmatpush3.msra.mxu0 %v2507_v59 }
 0xb12   :  { %2074 = vmatprep.subr.mxu0 %v2280_v36 }
 0xb13   :  { %2075 = vmatpush3.msra.mxu0 %v2538_v4 }
 0xbcc   :  { %v1326_v12 = vpop.f32.mrf.mxu0 }
 0xbcd   :  { %v1330_v17 = vadd.f32 %v1326_v12, %v742_v11 }
 0xbce   :  { %v2056_v18 = vpop.f32.mrf.mxu0 }
 0xbcf   :  { %2214 = vtanh.f32 %v1330_v17  ;;  %v1835_v20 = vmul.f32 -1.442695, %v1330_v17 }
 0xbd1   :  { %2216 = vpow2.f32 %v1835_v20 }
 0xbdc   :  { %v2215_v19 = vpop.eup %2214 }
 0xbdd   :  { %1340 = vrot.lane.b32.xlu0 %v2215_v19, %s2282_s0 }
 0xbde   :  { %v2217_v21 = vpop.eup %2216 }
 0xbdf   :  { %v1334_v23 = vadd.f32 1.0, %v2217_v21 }
 0xbe1   :  { %2218 = vrcp.f32 %v1334_v23 }
 0xbee   :  { %v2219_v28 = vpop.eup %2218 }
 0xbef   :  { %v1338_v16 = vmul.f32 %v2219_v28, %v1228_v46 }
 0xc4f   :  { %v1341_v24 = vpop.permute.xlu0 %1340 }
 0xc50   :  { %v1343_v25 = vmul.f32 %v2219_v28, %v1341_v24 }
 0xc52   :  { %1345 = vrot.lane.b32.xlu1 %v1343_v25, %s2283_s3 }
 0xcc4   :  { %v1346_v22 = vpop.permute.xlu1 %1345 }
 0xcc5   :  { %v1348_v55 = vadd.f32 %v1346_v22, %v1338_v16 }
 0xcc7   :  { %2220 = vtanh.f32 %v1348_v55 }
 0xcd4   :  { %v2221_v27 = vpop.eup %2220 }
 0xcd5   :  { %1351 = vrot.lane.b32.xlu0 %v2221_v27, %s2282_s0 }
 0xd47   :  { %v1352_v29 = vpop.permute.xlu0 %1351 }
 0xd48   :  { %v2703_v13 = vmul.f32 %v2219_v28, %v1352_v29 }
 0xd4a   :  { %1376 = vrot.lane.b32.xlu1 %v2703_v13, %s2283_s3 }
 0xdbc   :  { %v1377_v15 = vpop.permute.xlu1 %1376 }
 0xdbd   :  { %2066 = vmatmul.mubr.msk.f32.vlgmr.msra.gmra.mxu1 %vm762_vm1, %v1377_v15 }
 0xdbe   :  { %2080 = vmatpush3.msra.mxu1 %v2448_v42  ;;  %2087 = vmatprep.mubr.msk.f32.mxu1 %vm2281_vm0, %v2280_v36 }
 0xdbf   :  { %2081 = vmatprep.subr.mxu1 %v2280_v36 }
 0xdc0   :  { %2082 = vmatpush3.msra.mxu1 %v2479_v51 }
 0xdc1   :  { %2083 = vmatprep.subr.mxu1 %v2280_v36 }
 0xdc2   :  { %2084 = vmatpush3.msra.mxu1 %v2507_v59 }
 0xdc3   :  { %2085 = vmatprep.subr.mxu1 %v2280_v36 }
 0xdc4   :  { %2086 = vmatpush3.msra.mxu1 %v2538_v4 }
 0xe7d   :  { %v1446_v30 = vpop.f32.mrf.mxu1 }
 0xe7e   :  { %v1450_v31 = vadd.f32 %v1446_v30, %v2614_v43  ;;  %v11_v30 = vstv %s2799_s5 }
 0xe7f   :  { %v2067_v35 = vpop.f32.mrf.mxu1  ;;  %12 = vst [vmem:[#allocation2] sm:$0x1] %v11_v30 }
 0xe80   :  { %2222 = vtanh.f32 %v1450_v31  ;;  %v1837_v38 = vmul.f32 -1.442695, %v1450_v31 }
 0xe82   :  { %2224 = vpow2.f32 %v1837_v38 }
 0xe8d   :  { %v2223_v42 = vpop.eup %2222 }
 0xe8e   :  { %1460 = vrot.lane.b32.xlu0 %v2223_v42, %s2282_s0 }
 0xe8f   :  { %v2225_v39 = vpop.eup %2224 }
 0xe90   :  { %v1454_v51 = vadd.f32 1.0, %v2225_v39 }
 0xe92   :  { %2226 = vrcp.f32 %v1454_v51 }
 0xe9f   :  { %v2227_v40 = vpop.eup %2226 }
 0xea0   :  { %v1458_v36 = vmul.f32 %v2227_v40, %v1348_v55 }
 0xf00   :  { %v1461_v41 = vpop.permute.xlu0 %1460 }
 0xf01   :  { %v1463_v59 = vmul.f32 %v2227_v40, %v1461_v41 }
 0xf03   :  { %1465 = vrot.lane.b32.xlu1 %v1463_v59, %s2283_s3 }
 0xf75   :  { %v1466_v4 = vpop.permute.xlu1 %1465 }
 0xf76   :  { %v1468_v44 = vadd.f32 %v1466_v4, %v1458_v36 }
 0xf78   :  { %2228 = vtanh.f32 %v1468_v44 }
 0xf85   :  { %v2229_v43 = vpop.eup %2228 }
 0xf86   :  { %1471 = vrot.lane.b32.xlu0 %v2229_v43, %s2282_s0 }
 0xff8   :  { %v1472_v45 = vpop.permute.xlu0 %1471 }
 0xff9   :  { %v2721_v32 = vmul.f32 %v2227_v40, %v1472_v45 }
 0xffb   :  { %1496 = vrot.lane.b32.xlu1 %v2721_v32, %s2283_s3 }
0x106d   :  { %v1497_v33 = vpop.permute.xlu1 %1496 }
0x106e   :  { %2077 = vmatmul.mubr.msk.f32.vlgmr.msra.gmra.mxu0 %vm762_vm1, %v1497_v33 }
0x112e   :  { %v1566_v37 = vpop.f32.mrf.mxu0 }
0x112f   :  { %v1570_v47 = vadd.f32 %v1566_v37, %v2616_v48 }
0x1130   :  { %v2078_v49 = vpop.f32.mrf.mxu0 }
0x1131   :  { %2230 = vtanh.f32 %v1570_v47  ;;  %v1839_v54 = vmul.f32 -1.442695, %v1570_v47  ;;  %v2770_v47 = vld [vmem:[#allocation2] ss:$0 sm:$0xff] }
0x1133   :  { %2232 = vpow2.f32 %v1839_v54 }
0x113e   :  { %v2231_v53 = vpop.eup %2230 }
0x113f   :  { %1580 = vrot.lane.b32.xlu0 %v2231_v53, %s2282_s0 }
0x1140   :  { %v2233_v56 = vpop.eup %2232 }
0x1141   :  { %v1574_v57 = vadd.f32 1.0, %v2233_v56 }
0x1143   :  { %2234 = vrcp.f32 %v1574_v57 }
0x1150   :  { %v2235_v58 = vpop.eup %2234 }
0x1151   :  { %v1578_v62 = vmul.f32 %v2235_v58, %v1468_v44  ;;  %v2285_v44 = vmov 0  }
0x1152   :  { %2096 = vset.pattern.permute.xlu0 %v2285_v44  ;;  %2097 = vset.pattern.permute.xlu1 %v2285_v44 }
0x11b1   :  { %v1581_v60 = vpop.permute.xlu0 %1580 }
0x11b2   :  { %v1583_v61 = vmul.f32 %v2235_v58, %v1581_v60 }
0x11b4   :  { %1585 = vrot.lane.b32.xlu1 %v1583_v61, %s2283_s3 }
0x1226   :  { %v1586_v63 = vpop.permute.xlu1 %1585 }
0x1227   :  { %v1588_v0 = vadd.f32 %v1586_v63, %v1578_v62 }
0x1229   :  { %2236 = vtanh.f32 %v1588_v0 }
0x1236   :  { %v2237_v48 = vpop.eup %2236 }
0x1237   :  { %1591 = vrot.lane.b32.xlu0 %v2237_v48, %s2282_s0 }
0x12a9   :  { %v1592_v1 = vpop.permute.xlu0 %1591 }
0x12aa   :  { %v2730_v3 = vmul.f32 %v2235_v58, %v1592_v1 }
0x12ac   :  { %1616 = vrot.lane.b32.xlu1 %v2730_v3, %s2283_s3 }
0x131e   :  { %v1617_v5 = vpop.permute.xlu1 %1616 }
0x131f   :  { %2088 = vmatmul.mubr.msk.f32.vlgmr.msra.gmra.mxu1 %vm762_vm1, %v1617_v5 }
0x13df   :  { %v1686_v34 = vpop.f32.mrf.mxu1 }
0x13e0   :  { %v1690_v14 = vadd.f32 %v1686_v34, %v2618_v52 }
0x13e1   :  { %v2089_v46 = vpop.f32.mrf.mxu1 }
0x13e2   :  { %2238 = vtanh.f32 %v1690_v14  ;;  %v1841_v9 = vmul.f32 -1.442695, %v1690_v14 }
0x13e4   :  { %2240 = vpow2.f32 %v1841_v9 }
0x13ef   :  { %v2239_v6 = vpop.eup %2238 }
0x13f0   :  { %1700 = vrot.lane.b32.xlu0 %v2239_v6, %s2282_s0 }
0x13f1   :  { %v2241_v10 = vpop.eup %2240 }
0x13f2   :  { %v1694_v11 = vadd.f32 1.0, %v2241_v10 }
0x13f4   :  { %866 = vrot.lane.b32.xlu0 %v1826_v7, %s2284_s7  ;;  %2242 = vrcp.f32 %v1694_v11 }
0x1401   :  { %v2243_v12 = vpop.eup %2242 }
0x1402   :  { %v1698_v16 = vmul.f32 %v2243_v12, %v1588_v0 }
0x1462   :  { %v1701_v17 = vpop.permute.xlu0 %1700 }
0x1463   :  { %v1703_v18 = vmul.f32 %v2243_v12, %v1701_v17 }
0x1465   :  { %1705 = vrot.lane.b32.xlu1 %v1703_v18, %s2283_s3 }
0x1466   :  { %v867_v52 = vpop.permute.xlu0 %866 }
0x1467   :  { %v869_v19 = vmul.f32 %v867_v52, %v2622_v2  ;;  %v995_v20 = vmul.f32 %v2641_v26, %v867_v52  ;;  %v1115_v21 = vmul.f32 %v2662_v50, %v867_v52  ;;  %v1235_v23 = vmul.f32 %v2683_v8, %v867_v52 }
0x1468   :  { %v1355_v28 = vmul.f32 %v2703_v13, %v867_v52  ;;  %v1475_v24 = vmul.f32 %v2721_v32, %v867_v52  ;;  %v1595_v25 = vmul.f32 %v2730_v3, %v867_v52 }
0x1469   :  { %871 = vrot.lane.b32.xlu0 %v869_v19, %s2283_s3 }
0x146d   :  { %997 = vrot.lane.b32.xlu0 %v995_v20, %s2283_s3 }
0x1471   :  { %1117 = vrot.lane.b32.xlu0 %v1115_v21, %s2283_s3 }
0x1475   :  { %1237 = vrot.lane.b32.xlu0 %v1235_v23, %s2283_s3 }
0x1479   :  { %1357 = vrot.lane.b32.xlu0 %v1355_v28, %s2283_s3 }
0x147d   :  { %1477 = vrot.lane.b32.xlu0 %v1475_v24, %s2283_s3 }
0x1481   :  { %1597 = vrot.lane.b32.xlu0 %v1595_v25, %s2283_s3 }
0x14d7   :  { %v1706_v22 = vpop.permute.xlu1 %1705 }
0x14d8   :  { %v1708_v55 = vadd.f32 %v1706_v22, %v1698_v16 }
0x14da   :  { %2244 = vtanh.f32 %v1708_v55 }
0x14db   :  { %v872_v29 = vpop.permute.xlu0 %871 }
0x14dc   :  { %v874_v42 = vsel %vm762_vm1, %v872_v29, 0.0 }
0x14df   :  { %v998_v15 = vpop.permute.xlu0 %997 }
0x14e0   :  { %v1000_v38 = vsel %vm762_vm1, %v998_v15, 0.0 }
0x14e3   :  { %v1118_v31 = vpop.permute.xlu0 %1117 }
0x14e4   :  { %v1120_v51 = vsel %vm762_vm1, %v1118_v31, 0.0 }
0x14e7   :  { %v2245_v27 = vpop.eup %2244  ;;  %v1238_v35 = vpop.permute.xlu0 %1237 }
0x14e8   :  { %1711 = vrot.lane.b32.xlu1 %v2245_v27, %s2282_s0  ;;  %v1240_v37 = vsel %vm762_vm1, %v1238_v35, 0.0 }
0x14eb   :  { %v1358_v39 = vpop.permute.xlu0 %1357 }
0x14ec   :  { %v1360_v41 = vsel %vm762_vm1, %v1358_v39, 0.0 }
0x14ef   :  { %v1478_v40 = vpop.permute.xlu0 %1477 }
0x14f0   :  { %v1480_v59 = vsel %vm762_vm1, %v1478_v40, 0.0 }
0x14f3   :  { %v1598_v36 = vpop.permute.xlu0 %1597 }
0x14f4   :  { %v1600_v4 = vsel %vm762_vm1, %v1598_v36, 0.0 }
0x150c   :  { %875 = vadd.xlane.f32.xlu1 %v874_v42 }
0x1510   :  { %1001 = vadd.xlane.f32.xlu1 %v1000_v38 }
0x1514   :  { %1121 = vadd.xlane.f32.xlu1 %v1120_v51 }
0x1518   :  { %1361 = vadd.xlane.f32.xlu1 %v1360_v41 }
0x151c   :  { %1481 = vadd.xlane.f32.xlu1 %v1480_v59 }
0x1520   :  { %1601 = vadd.xlane.f32.xlu1 %v1600_v4 }
0x155a   :  { %v1712_v43 = vpop.permute.xlu1 %1711 }
0x155b   :  { %v2765_v45 = vmul.f32 %v2243_v12, %v1712_v43 }
0x155d   :  { %v1715_v33 = vmul.f32 %v2765_v45, %v867_v52 }
0x155f   :  { %1717 = vrot.lane.b32.xlu0 %v1715_v33, %s2283_s3 }
0x157e   :  { %1241 = vadd.xlane.f32.xlu0 %v1240_v37 }
0x1595   :  { %v876_v49 = vpop.xlane.xlu1 %875 }
0x1596   :  { %v883_v53 = vadd.f32 %v2770_v47, %v876_v49 }
0x1598   :  { %2246 = vtanh.f32 %v883_v53 }
0x1599   :  { %v1002_v54 = vpop.xlane.xlu1 %1001 }
0x159a   :  { %v1003_v56 = vadd.f32 %v2770_v47, %v1002_v54 }
0x159c   :  { %2248 = vtanh.f32 %v1003_v56 }
0x159d   :  { %v1122_v57 = vpop.xlane.xlu1 %1121 }
0x159e   :  { %v1123_v58 = vadd.f32 %v2770_v47, %v1122_v57 }
0x15a0   :  { %2250 = vtanh.f32 %v1123_v58 }
0x15a1   :  { %v1362_v14 = vpop.xlane.xlu1 %1361 }
0x15a2   :  { %v1363_v9 = vadd.f32 %v2770_v47, %v1362_v14 }
0x15a5   :  { %v2247_v60 = vpop.eup %2246  ;;  %v1482_v7 = vpop.xlane.xlu1 %1481 }
0x15a6   :  { %v885_v61 = vmul.f32 1.442695, %v2247_v60  ;;  %v1483_v10 = vadd.f32 %v2770_v47, %v1482_v7 }
0x15a8   :  { %2252 = vpow2.f32 %v885_v61 }
0x15a9   :  { %v2249_v62 = vpop.eup %2248  ;;  %v1602_v11 = vpop.xlane.xlu1 %1601 }
0x15aa   :  { %v1005_v63 = vmul.f32 1.442695, %v2249_v62  ;;  %v1603_v12 = vadd.f32 %v2770_v47, %v1602_v11 }
0x15ac   :  { %2254 = vpow2.f32 %v1005_v63 }
0x15ad   :  { %v2251_v0 = vpop.eup %2250 }
0x15ae   :  { %v1125_v48 = vmul.f32 1.442695, %v2251_v0 }
0x15b0   :  { %2256 = vpow2.f32 %v1125_v48 }
0x15b1   :  { %2258 = vtanh.f32 %v1363_v9 }
0x15b2   :  { %2260 = vtanh.f32 %v1483_v10 }
0x15b3   :  { %2262 = vtanh.f32 %v1603_v12 }
0x15b5   :  { %v2253_v1 = vpop.eup %2252 }
0x15b6   :  { %889 = vperm.xlu0 %2096, %v2253_v1  }
0x15b9   :  { %v2255_v5 = vpop.eup %2254 }
0x15ba   :  { %1009 = vperm.xlu0 %2096, %v2255_v5   ;;  %v1014_v34 = vadd.f32 %v2255_v5, %v2253_v1 }
0x15bd   :  { %v2257_v46 = vpop.eup %2256 }
0x15be   :  { %v1134_v6 = vadd.f32 %v2257_v46, %v1014_v34  ;;  %v2259_v52 = vpop.eup %2258 }
0x15bf   :  { %v1365_v19 = vmul.f32 1.442695, %v2259_v52  ;;  %v2261_v20 = vpop.eup %2260 }
0x15c0   :  { %v1485_v21 = vmul.f32 1.442695, %v2261_v20  ;;  %v2263_v23 = vpop.eup %2262 }
0x15c1   :  { %2264 = vpow2.f32 %v1365_v19  ;;  %v1605_v28 = vmul.f32 1.442695, %v2263_v23 }
0x15c2   :  { %2266 = vpow2.f32 %v1485_v21 }
0x15c3   :  { %2268 = vpow2.f32 %v1605_v28 }
0x15ce   :  { %v2265_v24 = vpop.eup %2264 }
0x15cf   :  { %v2267_v25 = vpop.eup %2266 }
0x15d0   :  { %v2269_v16 = vpop.eup %2268 }
0x15d1   :  { %v1718_v17 = vpop.permute.xlu0 %1717 }
0x15d2   :  { %v1720_v18 = vsel %vm762_vm1, %v1718_v17, 0.0 }
0x15d3   :  { %1721 = vadd.xlane.f32.xlu1 %v1720_v18 }
0x15e4   :  { %1129 = vperm.xlu1 %2097, %v2257_v46  }
0x15e8   :  { %1369 = vperm.xlu1 %2097, %v2265_v24  }
0x15ec   :  { %1489 = vperm.xlu1 %2097, %v2267_v25  }
0x15f0   :  { %1609 = vperm.xlu1 %2097, %v2269_v16  }
0x1607   :  { %v1242_v22 = vpop.xlane.xlu0 %1241 }
0x1608   :  { %v1243_v55 = vadd.f32 %v2770_v47, %v1242_v22 }
0x160a   :  { %2270 = vtanh.f32 %v1243_v55 }
0x1617   :  { %v2271_v27 = vpop.eup %2270 }
0x1618   :  { %v1245_v29 = vmul.f32 1.442695, %v2271_v27 }
0x161a   :  { %2272 = vpow2.f32 %v1245_v29 }
0x1627   :  { %v2273_v15 = vpop.eup %2272 }
0x1628   :  { %1249 = vperm.xlu0 %2096, %v2273_v15   ;;  %v1254_v30 = vadd.f32 %v2273_v15, %v1134_v6 }
0x162a   :  { %v1374_v31 = vadd.f32 %v2265_v24, %v1254_v30 }
0x162c   :  { %v1494_v35 = vadd.f32 %v2267_v25, %v1374_v31 }
0x162e   :  { %v1614_v42 = vadd.f32 %v2269_v16, %v1494_v35 }
0x1631   :  { %v890_v44 = vpop.permute.xlu0 %889 }
0x1632   :  { %v892_v54 = vmul.f32 %v890_v44, %v2622_v2 }
0x1635   :  { %v1010_v33 = vpop.permute.xlu0 %1009 }
0x1636   :  { %v1012_v37 = vmul.f32 %v1010_v33, %v2641_v26 }
0x1638   :  { %v1013_v56 = vadd.f32 %v1012_v37, %v892_v54 }
0x165c   :  { %v1722_v38 = vpop.xlane.xlu1 %1721 }
0x165d   :  { %v1723_v39 = vadd.f32 %v2770_v47, %v1722_v38 }
0x165f   :  { %2274 = vtanh.f32 %v1723_v39 }
0x1660   :  { %v1130_v36 = vpop.permute.xlu1 %1129 }
0x1661   :  { %v1132_v47 = vmul.f32 %v1130_v36, %v2662_v50 }
0x1663   :  { %v1133_v60 = vadd.f32 %v1132_v47, %v1013_v56 }
0x1664   :  { %v1370_v4 = vpop.permute.xlu1 %1369 }
0x1665   :  { %v1372_v63 = vmul.f32 %v1370_v4, %v2703_v13 }
0x1668   :  { %v1490_v43 = vpop.permute.xlu1 %1489 }
0x1669   :  { %v1492_v48 = vmul.f32 %v1490_v43, %v2721_v32 }
0x166c   :  { %v2275_v51 = vpop.eup %2274  ;;  %v1610_v49 = vpop.permute.xlu1 %1609 }
0x166d   :  { %v1725_v40 = vmul.f32 1.442695, %v2275_v51  ;;  %v1612_v1 = vmul.f32 %v1610_v49, %v2730_v3 }
0x166f   :  { %2276 = vpow2.f32 %v1725_v40 }
0x167c   :  { %v2277_v41 = vpop.eup %2276 }
0x167d   :  { %1729 = vperm.xlu1 %2097, %v2277_v41   ;;  %v1734_v59 = vadd.f32 %v2277_v41, %v1614_v42 }
0x1681   :  { %1737 = vperm.xlu1 %2097, %v1734_v59  }
0x16a3   :  { %v1250_v53 = vpop.permute.xlu0 %1249 }
0x16a4   :  { %v1252_v57 = vmul.f32 %v1250_v53, %v2683_v8 }
0x16a6   :  { %v1253_v61 = vadd.f32 %v1252_v57, %v1133_v60 }
0x16a8   :  { %v1373_v0 = vadd.f32 %v1372_v63, %v1253_v61 }
0x16aa   :  { %v1493_v26 = vadd.f32 %v1492_v48, %v1373_v0 }
0x16ac   :  { %v1613_v5 = vadd.f32 %v1612_v1, %v1493_v26 }
0x16f8   :  { %v1730_v58 = vpop.permute.xlu1 %1729 }
0x16f9   :  { %v1732_v2 = vmul.f32 %v1730_v58, %v2765_v45 }
0x16fb   :  { %v1733_v50 = vadd.f32 %v1732_v2, %v1613_v5 }
0x16fc   :  { %v1738_v62 = vpop.permute.xlu1 %1737 }
0x16fd   :  { %2278 = vrcp.f32 %v1738_v62 }
0x170a   :  { %v2279_v34 = vpop.eup %2278 }
0x170b   :  { %v1741_v14 = vmul.f32 %v2279_v34, %v1733_v50 }
0x170d   :  { %1743 = vrot.lane.b32.xlu0 %v1741_v14, %s2283_s3 }
0x177f   :  { %v1744_v8 = vpop.permute.xlu0 %1743 }
0x1780   :  { %v1746_v46 = vsel %vm762_vm1, %v1744_v8, 0.0 }
0x1781   :  { %1747 = vst [vmem:[%s2800_s6] sm:$0xff] %v1746_v46 }

</bundles_post_ra>
